<compile_context>
chip_gen: v5e
topology: v5e:2x2
jax: 0.10.0
libtpu: 0.0.40
codegen_flags: <defaults>
</compile_context>

<pallas_src>
import math

import jax
import jax.numpy as jnp
from jax.experimental import pallas as pl
from jax.experimental.pallas import tpu as pltpu


# ----------------------------- shared math helpers ----------------------------

def _gelu_tanh(x):
    c = math.sqrt(2.0 / math.pi)
    return 0.5 * x * (1.0 + jnp.tanh(c * (x + 0.044715 * x * x * x)))


def _layer_norm(x, gamma, beta, eps):
    mu = jnp.mean(x, axis=-1, keepdims=True)
    xc = x - mu
    var = jnp.mean(xc * xc, axis=-1, keepdims=True)
    return xc * jax.lax.rsqrt(var + eps) * gamma + beta


# --------------------------------- the kernel ---------------------------------

def _make_encoder_kernel(B, S, H, num_heads, I, CI, eps):
    dH = H // num_heads
    NC = I // CI          # number of FFN intermediate slabs (static)

    def kernel(x_ref, mask_ref,
               wqkv_ref, bqkv_ref, wo_ref, vec_ref,
               wi_ref, bi_ref, wd_ref,
               out_ref, h_ref, ctx_ref, in_sem):
        layer = pl.program_id(0)
        last = pl.num_programs(0) - 1

        # Layer 0: pull the (B*S, H) f32 encoder input into the VMEM residual
        # carry with one manual DMA (input is memory_space=ANY -> no auto
        # double-buffered (B,S,H) staging buffer).
        @pl.when(layer == 0)
        def _():
            cp = pltpu.make_async_copy(x_ref, h_ref, in_sem)
            cp.start()
            cp.wait()

        h = h_ref[...]                       # (B*S, H) f32 residual stream
        hb = h.astype(jnp.bfloat16)
        mask = mask_ref[...]                 # (B, 1, S) additive attention mask

        # ---- fused Q|K|V projection (bf16 MXU, f32 accumulation).
        # The 1/sqrt(dH) scale is pre-folded into the Q columns and bq.
        qkv = jnp.dot(hb, wqkv_ref[0], preferred_element_type=jnp.float32)
        qkv = qkv + bqkv_ref[0]              # (B*S, 3H)

        # ---- per-head attention; each head's context is written straight into
        # the ctx VMEM scratch at its static lane offset (no concatenate).
        # TODO(synk): for dH=64 configs, process head pairs for 128-lane slices.
        for n in range(num_heads):
            q_sl = slice(n * dH, (n + 1) * dH)
            qn = qkv[:, q_sl].reshape(B, S, dH).astype(jnp.bfloat16)
            kn = qkv[:, H + n * dH: H + (n + 1) * dH].reshape(B, S, dH).astype(jnp.bfloat16)
            vn = qkv[:, 2 * H + n * dH: 2 * H + (n + 1) * dH].reshape(B, S, dH).astype(jnp.bfloat16)

            s = jnp.einsum('bqd,bkd->bqk', qn, kn,
                           preferred_element_type=jnp.float32)
            s = s + mask                     # (B,S,S) + (B,1,S); scale pre-folded

            m = jnp.max(s, axis=-1, keepdims=True)
            e = jnp.exp(s - m)
            denom = jnp.sum(e, axis=-1, keepdims=True)
            # attention-probs dropout: identity in eval mode.

            # Flash-style: matmul the unnormalized probs, rescale the (B,S,dH)
            # result (S/dH fewer VPU multiplies than rescaling the score matrix).
            ctx_n = jnp.einsum('bqk,bkd->bqd', e.astype(jnp.bfloat16), vn,
                               preferred_element_type=jnp.float32)
            ctx_n = ctx_n * pl.reciprocal(denom, approx=True)
            ctx_ref[:, q_sl] = ctx_n.reshape(B * S, dH).astype(jnp.bfloat16)

        # ---- packed per-layer small vectors: [bo, ln1_g, ln1_b, bd, ln2_g, ln2_b]
        vec = vec_ref[0]                     # (6, H) f32
        bo, g1, be1 = vec[0:1], vec[1:2], vec[2:3]
        bd, g2, be2 = vec[3:4], vec[4:5], vec[5:6]

        # ---- attention output projection + residual + LayerNorm ----
        attn = jnp.dot(ctx_ref[...], wo_ref[0],
                       preferred_element_type=jnp.float32) + bo
        attn = _layer_norm(attn + h, g1, be1, eps)
        attn_b = attn.astype(jnp.bfloat16)

        # ---- feed-forward, streamed in CI-wide slabs of the intermediate so the
        # (B*S, I) f32 GELU activation is never materialized.
        ffn = jnp.broadcast_to(bd, (B * S, H))
        for c in range(NC):
            csl = slice(c * CI, (c + 1) * CI)
            inter_c = _gelu_tanh(
                jnp.dot(attn_b, wi_ref[0, :, csl],
                        preferred_element_type=jnp.float32) + bi_ref[0, :, csl])
            ffn = ffn + jnp.dot(inter_c.astype(jnp.bfloat16), wd_ref[0, csl, :],
                                preferred_element_type=jnp.float32)
        new_h = _layer_norm(ffn + attn, g2, be2, eps)

        # Carry to the next layer; only the final layer writes the output block.
        @pl.when(layer < last)
        def _():
            h_ref[...] = new_h

        @pl.when(layer == last)
        def _():
            out_ref[...] = new_h.reshape(B, S, H).astype(out_ref.dtype)

    return kernel


# --------------------------------- the wrapper ---------------------------------

def roberta_encoder_forward(hidden_states, attention_mask_add, params, *,
                            num_heads, layer_norm_eps=1e-12):
    """hidden_states: (B, S, H); attention_mask_add: (B, 1, S) additive mask.
    params: dict from pack_params (fused/pre-transposed bf16 weights)."""
    B, S, H = hidden_states.shape
    L, _, I = params['wi'].shape
    CI = 512 if (I > 512 and I % 512 == 0) else I

    kernel = _make_encoder_kernel(B, S, H, num_heads, I, CI, layer_norm_eps)

    x2d = hidden_states.reshape(B * S, H).astype(jnp.float32)
    mask = attention_mask_add.astype(jnp.float32)

    def per_layer(shape):
        nd = len(shape)
        return pl.BlockSpec((1,) + shape, lambda l, _nd=nd: (l,) + (0,) * _nd)

    in_specs = [
        pl.BlockSpec(memory_space=pl.ANY),              # encoder input, DMA'd at l==0
        pl.BlockSpec((B, 1, S), lambda l: (0, 0, 0)),   # additive attention mask
        per_layer((H, 3 * H)),                          # wqkv (scale folded into Q)
        per_layer((1, 3 * H)),                          # bqkv
        per_layer((H, H)),                              # wo
        per_layer((6, H)),                              # packed bo/ln1/bd/ln2 vectors
        per_layer((H, I)),                              # wi
        per_layer((1, I)),                              # bi
        per_layer((I, H)),                              # wd
    ]

    # VMEM budget: double-buffered per-layer params + carries + working set.
    out_item = jnp.dtype(hidden_states.dtype).itemsize
    w_bytes = 2 * ((H * 3 * H + H * H + H * I + I * H) * 2      # bf16 weights x2 bufs
                   + (3 * H + 6 * H + I) * 4)                   # f32 vectors x2 bufs
    carry_bytes = B * S * H * (4 + 2)                           # f32 residual + bf16 ctx
    io_bytes = 2 * B * S * 4 + 2 * B * S * H * out_item         # mask + output block
    act_bytes = B * S * (3 * H * 4 + 2 * S * 4 + 4 * H * 4 + 2 * CI * 4)
    vmem_limit = int(min(max(int(1.5 * (w_bytes + carry_bytes + io_bytes + act_bytes)),
                             32 * 1024 * 1024),
                         100 * 1024 * 1024))

    args = (x2d, mask,
            params['wqkv'], params['bqkv'], params['wo'], params['vecs'],
            params['wi'], params['bi'], params['wd'])

    return pl.pallas_call(
        kernel,
        out_shape=jax.ShapeDtypeStruct((B, S, H), hidden_states.dtype),
        grid_spec=pltpu.PrefetchScalarGridSpec(
            num_scalar_prefetch=0,
            grid=(L,),
            in_specs=in_specs,
            out_specs=pl.BlockSpec((B, S, H), lambda l: (0, 0, 0)),
            scratch_shapes=[
                pltpu.VMEM((B * S, H), jnp.float32),    # residual carry
                pltpu.VMEM((B * S, H), jnp.bfloat16),   # attention context
                pltpu.SemaphoreType.DMA(()),            # layer-0 input DMA
            ],
        ),
        compiler_params=pltpu.CompilerParams(
            dimension_semantics=("arbitrary",),          # layers are sequential
            vmem_limit_bytes=vmem_limit,
        ),
    )(*args)


# ------------------------- parameters (torch convention) -----------------------

def init_params(key, L, H, I):
    """Per-layer params in torch nn.Linear convention: weight is (out, in)."""
    layers = []
    for _ in range(L):
        key, *ks = jax.random.split(key, 17)

        def lin(k, o, i_):
            return jax.random.normal(k, (o, i_), jnp.float32) / math.sqrt(i_)

        def vec(k, n, scale=0.02):
            return scale * jax.random.normal(k, (n,), jnp.float32)

        layers.append(dict(
            wq=lin(ks[0], H, H),  bq=vec(ks[1], H),
            wk=lin(ks[2], H, H),  bk=vec(ks[3], H),
            wv=lin(ks[4], H, H),  bv=vec(ks[5], H),
            wo=lin(ks[6], H, H),  bo=vec(ks[7], H),
            ln1_g=1.0 + vec(ks[8], H, 0.1), ln1_b=vec(ks[9], H, 0.1),
            wi=lin(ks[10], I, H), bi=vec(ks[11], I),
            wd=lin(ks[12], H, I), bd=vec(ks[13], H),
            ln2_g=1.0 + vec(ks[14], H, 0.1), ln2_b=vec(ks[15], H, 0.1),
        ))
    return layers


def pack_params(layers, num_heads):
    """Stack per-layer torch-convention params into the kernel layout:
      - Q|K|V fused, transposed to (in, out), bf16, 1/sqrt(dH) folded into Q & bq,
      - wo/wi/wd transposed to (in, out), bf16,
      - small vectors batched: vecs (L,6,H) = [bo, ln1_g, ln1_b, bd, ln2_g, ln2_b]."""
    H = layers[0]['wq'].shape[0]
    dH = H // num_heads
    scale = 1.0 / math.sqrt(dH)

    def stack(fn):
        return jnp.stack([fn(l) for l in layers])

    return dict(
        wqkv=stack(lambda l: jnp.concatenate(
            [l['wq'].T * scale, l['wk'].T, l['wv'].T], axis=-1)).astype(jnp.bfloat16),
        bqkv=stack(lambda l: jnp.concatenate(
            [l['bq'] * scale, l['bk'], l['bv']]).reshape(1, -1)),
        wo=stack(lambda l: l['wo'].T).astype(jnp.bfloat16),
        vecs=stack(lambda l: jnp.stack(
            [l['bo'], l['ln1_g'], l['ln1_b'], l['bd'], l['ln2_g'], l['ln2_b']])),
        wi=stack(lambda l: l['wi'].T).astype(jnp.bfloat16),
        bi=stack(lambda l: l['bi'].reshape(1, -1)),
        wd=stack(lambda l: l['wd'].T).astype(jnp.bfloat16),
    )


# --------------------------- pure-JAX f32 reference ----------------------------

def encoder_reference(h, mask_add, layers, num_heads, eps):
    B, S, H = h.shape
    dH = H // num_heads
    for p in layers:
        q = h @ p['wq'].T + p['bq']
        k = h @ p['wk'].T + p['bk']
        v = h @ p['wv'].T + p['bv']

        def split(x):
            return x.reshape(B, S, num_heads, dH).transpose(0, 2, 1, 3)

        qh, kh, vh = split(q), split(k), split(v)
        s = jnp.einsum('bnqd,bnkd->bnqk', qh, kh) / math.sqrt(dH)
        s = s + mask_add[:, None, :, :]
        probs = jax.nn.softmax(s, axis=-1)
        ctx = jnp.einsum('bnqk,bnkd->bnqd', probs, vh)
        ctx = ctx.transpose(0, 2, 1, 3).reshape(B, S, H)

        attn = ctx @ p['wo'].T + p['bo']
        attn = _layer_norm(attn + h, p['ln1_g'], p['ln1_b'], eps)

        inter = _gelu_tanh(attn @ p['wi'].T + p['bi'])
        ffn = inter @ p['wd'].T + p['bd']
        h = _layer_norm(ffn + attn, p['ln2_g'], p['ln2_b'], eps)
    return h


# ------------------------------------ main --------------------------------------

if __name__ == "__main__":
    # Small RoBERTa-like config: 2 layers, batch=2, seq=8, hidden=32, 4 heads, FFN=4H.
    B, S, H, NH, L = 2, 8, 32, 4, 2
    I = 4 * H
    EPS = 1e-12

    key = jax.random.PRNGKey(0)
    key, kx = jax.random.split(key)
    hidden = jax.random.normal(kx, (B, S, H), jnp.float32)

    # Binary padding mask (batch 1 has its last 2 tokens padded) -> HF additive mask.
    valid = jnp.ones((B, S), jnp.float32).at[1, -2:].set(0.0)
    mask_add = ((1.0 - valid) * -10000.0).reshape(B, 1, S)

    layers = init_params(key, L, H, I)
    packed = pack_params(layers, NH)

    out = roberta_encoder_forward(hidden, mask_add, packed,
                                  num_heads=NH, layer_norm_eps=EPS)
    out = jax.block_until_ready(out)

    ref = encoder_reference(hidden, mask_add, layers, NH, EPS)
    assert out.shape == (B, S, H)
    # Tolerance accounts for bf16 weights/activations feeding the MXU inside the
    # kernel (f32 accumulation) vs the all-f32 reference.
    assert jnp.allclose(out, ref, atol=5e-2, rtol=5e-2), \
        float(jnp.max(jnp.abs(out - ref)))

    print("KERNEL_OK")
</pallas_src>

<mosaic_0001>
module attributes {stable_mosaic.version = 11 : i64} {
  func.func @kernel(%arg0: i32, %arg1: memref<16x32xf32, #tpu.memory_space<any>>, %arg2: memref<2x1x8xf32, #tpu.memory_space<vmem>>, %arg3: memref<1x32x96xbf16, #tpu.memory_space<vmem>>, %arg4: memref<1x1x96xf32, #tpu.memory_space<vmem>>, %arg5: memref<1x32x32xbf16, #tpu.memory_space<vmem>>, %arg6: memref<1x6x32xf32, #tpu.memory_space<vmem>>, %arg7: memref<1x32x128xbf16, #tpu.memory_space<vmem>>, %arg8: memref<1x1x128xf32, #tpu.memory_space<vmem>>, %arg9: memref<1x128x32xbf16, #tpu.memory_space<vmem>>, %arg10: memref<2x8x32xf32, #tpu.memory_space<vmem>>, %arg11: memref<16x32xf32, #tpu.memory_space<vmem>>, %arg12: memref<16x32xbf16, #tpu.memory_space<vmem>>, %arg13: memref<!tpu.dma_semaphore, #tpu.memory_space<semaphore_mem>>) attributes {dimension_semantics = [#tpu.dimension_semantics<arbitrary>], iteration_bounds = array<i64: 2>, scalar_prefetch = 0 : i64, scratch_operands = 3 : i64, tpu.core_type = #tpu.core_type<tc>, window_params = [{}, {pipeline_mode = #tpu.pipeline_mode<synchronous>, transform_indices = @transform_1, window_bounds = array<i64: 2, 1, 8>}, {transform_indices = @transform_2, window_bounds = array<i64: 1, 32, 96>}, {transform_indices = @transform_3, window_bounds = array<i64: 1, 1, 96>}, {transform_indices = @transform_4, window_bounds = array<i64: 1, 32, 32>}, {transform_indices = @transform_5, window_bounds = array<i64: 1, 6, 32>}, {transform_indices = @transform_6, window_bounds = array<i64: 1, 32, 128>}, {transform_indices = @transform_7, window_bounds = array<i64: 1, 1, 128>}, {transform_indices = @transform_8, window_bounds = array<i64: 1, 128, 32>}, {pipeline_mode = #tpu.pipeline_mode<synchronous>, transform_indices = @transform_9, window_bounds = array<i64: 2, 8, 32>}]} {
    %c0_i32 = arith.constant 0 : i32
    %0 = arith.cmpi eq, %arg0, %c0_i32 : i32
    %1 = arith.extui %0 : i1 to i32
    %c0_i32_0 = arith.constant 0 : i32
    %2 = arith.cmpi ne, %1, %c0_i32_0 : i32
    scf.if %2 {
      tpu.enqueue_dma source(%arg1 : memref<16x32xf32, #tpu.memory_space<any>>) target(%arg11 : memref<16x32xf32, #tpu.memory_space<vmem>>) target_semaphore(%arg13 : memref<!tpu.dma_semaphore, #tpu.memory_space<semaphore_mem>>)
      tpu.wait_dma2 semaphore(%arg13 : memref<!tpu.dma_semaphore, #tpu.memory_space<semaphore_mem>>) src(%arg1 : memref<16x32xf32, #tpu.memory_space<any>>) dst(%arg11 : memref<16x32xf32, #tpu.memory_space<vmem>>)
    } else {
    }
    %c0 = arith.constant 0 : index
    %c0_1 = arith.constant 0 : index
    %3 = vector.load %arg11[%c0, %c0_1] : memref<16x32xf32, #tpu.memory_space<vmem>>, vector<16x32xf32>
    %4 = arith.truncf %3 : vector<16x32xf32> to vector<16x32xbf16>
    %c0_2 = arith.constant 0 : index
    %c0_3 = arith.constant 0 : index
    %c0_4 = arith.constant 0 : index
    %5 = vector.load %arg2[%c0_2, %c0_3, %c0_4] : memref<2x1x8xf32, #tpu.memory_space<vmem>>, vector<2x1x8xf32>
    %c0_5 = arith.constant 0 : index
    %c0_6 = arith.constant 0 : index
    %c0_7 = arith.constant 0 : index
    %6 = vector.load %arg3[%c0_5, %c0_6, %c0_7] : memref<1x32x96xbf16, #tpu.memory_space<vmem>>, vector<1x32x96xbf16>
    %7 = vector.shape_cast %6 : vector<1x32x96xbf16> to vector<32x96xbf16>
    %cst = arith.constant dense<0.000000e+00> : vector<16x96xf32>
    %8 = tpu.matmul %4, %7, %cst {dimension_numbers = #tpu.dot_dimension_numbers<[1], [0], [0], [1], [0, 0, 1, 1], [], []>} : vector<16x32xbf16>, vector<32x96xbf16>, vector<16x96xf32> -> vector<16x96xf32>
    %c0_8 = arith.constant 0 : index
    %c0_9 = arith.constant 0 : index
    %c0_10 = arith.constant 0 : index
    %9 = vector.load %arg4[%c0_8, %c0_9, %c0_10] : memref<1x1x96xf32, #tpu.memory_space<vmem>>, vector<1x1x96xf32>
    %10 = vector.shape_cast %9 : vector<1x1x96xf32> to vector<1x96xf32>
    %11 = vector.broadcast %10 : vector<1x96xf32> to vector<16x96xf32>
    %12 = arith.addf %8, %11 : vector<16x96xf32>
    %13 = vector.extract_strided_slice %12 {offsets = [0, 0], sizes = [16, 8], strides = [1, 1]} : vector<16x96xf32> to vector<16x8xf32>
    %14 = vector.shape_cast %13 : vector<16x8xf32> to vector<2x8x8xf32>
    %15 = arith.truncf %14 : vector<2x8x8xf32> to vector<2x8x8xbf16>
    %16 = vector.extract_strided_slice %12 {offsets = [0, 32], sizes = [16, 8], strides = [1, 1]} : vector<16x96xf32> to vector<16x8xf32>
    %17 = vector.shape_cast %16 : vector<16x8xf32> to vector<2x8x8xf32>
    %18 = arith.truncf %17 : vector<2x8x8xf32> to vector<2x8x8xbf16>
    %19 = vector.extract_strided_slice %12 {offsets = [0, 64], sizes = [16, 8], strides = [1, 1]} : vector<16x96xf32> to vector<16x8xf32>
    %20 = vector.shape_cast %19 : vector<16x8xf32> to vector<2x8x8xf32>
    %21 = arith.truncf %20 : vector<2x8x8xf32> to vector<2x8x8xbf16>
    "tpu.trace_start"() <{level = 10 : i32, message = "bqd,bkd->bqk"}> : () -> ()
    %cst_11 = arith.constant dense<0.000000e+00> : vector<2x8x8xf32>
    %22 = tpu.matmul %15, %18, %cst_11 {dimension_numbers = #tpu.dot_dimension_numbers<[2], [2], [1], [1], [0, 0, 0, 1, 1, 1], [0], [0]>} : vector<2x8x8xbf16>, vector<2x8x8xbf16>, vector<2x8x8xf32> -> vector<2x8x8xf32>
    "tpu.trace_stop"() : () -> ()
    %23 = vector.broadcast %5 : vector<2x1x8xf32> to vector<2x8x8xf32>
    %24 = arith.addf %22, %23 : vector<2x8x8xf32>
    %cst_12 = arith.constant dense<0xFF800000> : vector<2x8xf32>
    %25 = vector.multi_reduction <maximumf>, %24, %cst_12 [2] : vector<2x8x8xf32> to vector<2x8xf32>
    %26 = vector.shape_cast %25 : vector<2x8xf32> to vector<2x8x1xf32>
    %27 = vector.broadcast %26 : vector<2x8x1xf32> to vector<2x8x8xf32>
    %28 = arith.subf %24, %27 : vector<2x8x8xf32>
    %29 = math.exp %28 : vector<2x8x8xf32>
    %cst_13 = arith.constant dense<0.000000e+00> : vector<2x8xf32>
    %30 = vector.multi_reduction <add>, %29, %cst_13 [2] : vector<2x8x8xf32> to vector<2x8xf32>
    %31 = vector.shape_cast %30 : vector<2x8xf32> to vector<2x8x1xf32>
    %32 = arith.truncf %29 : vector<2x8x8xf32> to vector<2x8x8xbf16>
    "tpu.trace_start"() <{level = 10 : i32, message = "bqk,bkd->bqd"}> : () -> ()
    %cst_14 = arith.constant dense<0.000000e+00> : vector<2x8x8xf32>
    %33 = tpu.matmul %32, %21, %cst_14 {dimension_numbers = #tpu.dot_dimension_numbers<[2], [1], [1], [2], [0, 0, 0, 1, 1, 2], [0], [0]>} : vector<2x8x8xbf16>, vector<2x8x8xbf16>, vector<2x8x8xf32> -> vector<2x8x8xf32>
    "tpu.trace_stop"() : () -> ()
    %34 = tpu.reciprocal %31 {approx = true} : vector<2x8x1xf32> -> vector<2x8x1xf32>
    %35 = vector.broadcast %34 : vector<2x8x1xf32> to vector<2x8x8xf32>
    %36 = arith.mulf %33, %35 : vector<2x8x8xf32>
    %37 = vector.shape_cast %36 : vector<2x8x8xf32> to vector<16x8xf32>
    %38 = arith.truncf %37 : vector<16x8xf32> to vector<16x8xbf16>
    %c0_15 = arith.constant 0 : index
    %c0_16 = arith.constant 0 : index
    %39 = vector.load %arg12[%c0_15, %c0_16] : memref<16x32xbf16, #tpu.memory_space<vmem>>, vector<16x8xbf16>
    tpu.vector_store %arg12[%c0_15, %c0_16], %38 {strides = array<i32>} : memref<16x32xbf16, #tpu.memory_space<vmem>>, vector<16x8xbf16>,
    %40 = vector.extract_strided_slice %12 {offsets = [0, 8], sizes = [16, 8], strides = [1, 1]} : vector<16x96xf32> to vector<16x8xf32>
    %41 = vector.shape_cast %40 : vector<16x8xf32> to vector<2x8x8xf32>
    %42 = arith.truncf %41 : vector<2x8x8xf32> to vector<2x8x8xbf16>
    %43 = vector.extract_strided_slice %12 {offsets = [0, 40], sizes = [16, 8], strides = [1, 1]} : vector<16x96xf32> to vector<16x8xf32>
    %44 = vector.shape_cast %43 : vector<16x8xf32> to vector<2x8x8xf32>
    %45 = arith.truncf %44 : vector<2x8x8xf32> to vector<2x8x8xbf16>
    %46 = vector.extract_strided_slice %12 {offsets = [0, 72], sizes = [16, 8], strides = [1, 1]} : vector<16x96xf32> to vector<16x8xf32>
    %47 = vector.shape_cast %46 : vector<16x8xf32> to vector<2x8x8xf32>
    %48 = arith.truncf %47 : vector<2x8x8xf32> to vector<2x8x8xbf16>
    "tpu.trace_start"() <{level = 10 : i32, message = "bqd,bkd->bqk"}> : () -> ()
    %cst_17 = arith.constant dense<0.000000e+00> : vector<2x8x8xf32>
    %49 = tpu.matmul %42, %45, %cst_17 {dimension_numbers = #tpu.dot_dimension_numbers<[2], [2], [1], [1], [0, 0, 0, 1, 1, 1], [0], [0]>} : vector<2x8x8xbf16>, vector<2x8x8xbf16>, vector<2x8x8xf32> -> vector<2x8x8xf32>
    "tpu.trace_stop"() : () -> ()
    %50 = vector.broadcast %5 : vector<2x1x8xf32> to vector<2x8x8xf32>
    %51 = arith.addf %49, %50 : vector<2x8x8xf32>
    %cst_18 = arith.constant dense<0xFF800000> : vector<2x8xf32>
    %52 = vector.multi_reduction <maximumf>, %51, %cst_18 [2] : vector<2x8x8xf32> to vector<2x8xf32>
    %53 = vector.shape_cast %52 : vector<2x8xf32> to vector<2x8x1xf32>
    %54 = vector.broadcast %53 : vector<2x8x1xf32> to vector<2x8x8xf32>
    %55 = arith.subf %51, %54 : vector<2x8x8xf32>
    %56 = math.exp %55 : vector<2x8x8xf32>
    %cst_19 = arith.constant dense<0.000000e+00> : vector<2x8xf32>
    %57 = vector.multi_reduction <add>, %56, %cst_19 [2] : vector<2x8x8xf32> to vector<2x8xf32>
    %58 = vector.shape_cast %57 : vector<2x8xf32> to vector<2x8x1xf32>
    %59 = arith.truncf %56 : vector<2x8x8xf32> to vector<2x8x8xbf16>
    "tpu.trace_start"() <{level = 10 : i32, message = "bqk,bkd->bqd"}> : () -> ()
    %cst_20 = arith.constant dense<0.000000e+00> : vector<2x8x8xf32>
    %60 = tpu.matmul %59, %48, %cst_20 {dimension_numbers = #tpu.dot_dimension_numbers<[2], [1], [1], [2], [0, 0, 0, 1, 1, 2], [0], [0]>} : vector<2x8x8xbf16>, vector<2x8x8xbf16>, vector<2x8x8xf32> -> vector<2x8x8xf32>
    "tpu.trace_stop"() : () -> ()
    %61 = tpu.reciprocal %58 {approx = true} : vector<2x8x1xf32> -> vector<2x8x1xf32>
    %62 = vector.broadcast %61 : vector<2x8x1xf32> to vector<2x8x8xf32>
    %63 = arith.mulf %60, %62 : vector<2x8x8xf32>
    %64 = vector.shape_cast %63 : vector<2x8x8xf32> to vector<16x8xf32>
    %65 = arith.truncf %64 : vector<16x8xf32> to vector<16x8xbf16>
    %c0_21 = arith.constant 0 : index
    %c8 = arith.constant 8 : index
    %66 = vector.load %arg12[%c0_21, %c8] : memref<16x32xbf16, #tpu.memory_space<vmem>>, vector<16x8xbf16>
    tpu.vector_store %arg12[%c0_21, %c8], %65 {strides = array<i32>} : memref<16x32xbf16, #tpu.memory_space<vmem>>, vector<16x8xbf16>,
    %67 = vector.extract_strided_slice %12 {offsets = [0, 16], sizes = [16, 8], strides = [1, 1]} : vector<16x96xf32> to vector<16x8xf32>
    %68 = vector.shape_cast %67 : vector<16x8xf32> to vector<2x8x8xf32>
    %69 = arith.truncf %68 : vector<2x8x8xf32> to vector<2x8x8xbf16>
    %70 = vector.extract_strided_slice %12 {offsets = [0, 48], sizes = [16, 8], strides = [1, 1]} : vector<16x96xf32> to vector<16x8xf32>
    %71 = vector.shape_cast %70 : vector<16x8xf32> to vector<2x8x8xf32>
    %72 = arith.truncf %71 : vector<2x8x8xf32> to vector<2x8x8xbf16>
    %73 = vector.extract_strided_slice %12 {offsets = [0, 80], sizes = [16, 8], strides = [1, 1]} : vector<16x96xf32> to vector<16x8xf32>
    %74 = vector.shape_cast %73 : vector<16x8xf32> to vector<2x8x8xf32>
    %75 = arith.truncf %74 : vector<2x8x8xf32> to vector<2x8x8xbf16>
    "tpu.trace_start"() <{level = 10 : i32, message = "bqd,bkd->bqk"}> : () -> ()
    %cst_22 = arith.constant dense<0.000000e+00> : vector<2x8x8xf32>
    %76 = tpu.matmul %69, %72, %cst_22 {dimension_numbers = #tpu.dot_dimension_numbers<[2], [2], [1], [1], [0, 0, 0, 1, 1, 1], [0], [0]>} : vector<2x8x8xbf16>, vector<2x8x8xbf16>, vector<2x8x8xf32> -> vector<2x8x8xf32>
    "tpu.trace_stop"() : () -> ()
    %77 = vector.broadcast %5 : vector<2x1x8xf32> to vector<2x8x8xf32>
    %78 = arith.addf %76, %77 : vector<2x8x8xf32>
    %cst_23 = arith.constant dense<0xFF800000> : vector<2x8xf32>
    %79 = vector.multi_reduction <maximumf>, %78, %cst_23 [2] : vector<2x8x8xf32> to vector<2x8xf32>
    %80 = vector.shape_cast %79 : vector<2x8xf32> to vector<2x8x1xf32>
    %81 = vector.broadcast %80 : vector<2x8x1xf32> to vector<2x8x8xf32>
    %82 = arith.subf %78, %81 : vector<2x8x8xf32>
    %83 = math.exp %82 : vector<2x8x8xf32>
    %cst_24 = arith.constant dense<0.000000e+00> : vector<2x8xf32>
    %84 = vector.multi_reduction <add>, %83, %cst_24 [2] : vector<2x8x8xf32> to vector<2x8xf32>
    %85 = vector.shape_cast %84 : vector<2x8xf32> to vector<2x8x1xf32>
    %86 = arith.truncf %83 : vector<2x8x8xf32> to vector<2x8x8xbf16>
    "tpu.trace_start"() <{level = 10 : i32, message = "bqk,bkd->bqd"}> : () -> ()
    %cst_25 = arith.constant dense<0.000000e+00> : vector<2x8x8xf32>
    %87 = tpu.matmul %86, %75, %cst_25 {dimension_numbers = #tpu.dot_dimension_numbers<[2], [1], [1], [2], [0, 0, 0, 1, 1, 2], [0], [0]>} : vector<2x8x8xbf16>, vector<2x8x8xbf16>, vector<2x8x8xf32> -> vector<2x8x8xf32>
    "tpu.trace_stop"() : () -> ()
    %88 = tpu.reciprocal %85 {approx = true} : vector<2x8x1xf32> -> vector<2x8x1xf32>
    %89 = vector.broadcast %88 : vector<2x8x1xf32> to vector<2x8x8xf32>
    %90 = arith.mulf %87, %89 : vector<2x8x8xf32>
    %91 = vector.shape_cast %90 : vector<2x8x8xf32> to vector<16x8xf32>
    %92 = arith.truncf %91 : vector<16x8xf32> to vector<16x8xbf16>
    %c0_26 = arith.constant 0 : index
    %c16 = arith.constant 16 : index
    %93 = vector.load %arg12[%c0_26, %c16] : memref<16x32xbf16, #tpu.memory_space<vmem>>, vector<16x8xbf16>
    tpu.vector_store %arg12[%c0_26, %c16], %92 {strides = array<i32>} : memref<16x32xbf16, #tpu.memory_space<vmem>>, vector<16x8xbf16>,
    %94 = vector.extract_strided_slice %12 {offsets = [0, 24], sizes = [16, 8], strides = [1, 1]} : vector<16x96xf32> to vector<16x8xf32>
    %95 = vector.shape_cast %94 : vector<16x8xf32> to vector<2x8x8xf32>
    %96 = arith.truncf %95 : vector<2x8x8xf32> to vector<2x8x8xbf16>
    %97 = vector.extract_strided_slice %12 {offsets = [0, 56], sizes = [16, 8], strides = [1, 1]} : vector<16x96xf32> to vector<16x8xf32>
    %98 = vector.shape_cast %97 : vector<16x8xf32> to vector<2x8x8xf32>
    %99 = arith.truncf %98 : vector<2x8x8xf32> to vector<2x8x8xbf16>
    %100 = vector.extract_strided_slice %12 {offsets = [0, 88], sizes = [16, 8], strides = [1, 1]} : vector<16x96xf32> to vector<16x8xf32>
    %101 = vector.shape_cast %100 : vector<16x8xf32> to vector<2x8x8xf32>
    %102 = arith.truncf %101 : vector<2x8x8xf32> to vector<2x8x8xbf16>
    "tpu.trace_start"() <{level = 10 : i32, message = "bqd,bkd->bqk"}> : () -> ()
    %cst_27 = arith.constant dense<0.000000e+00> : vector<2x8x8xf32>
    %103 = tpu.matmul %96, %99, %cst_27 {dimension_numbers = #tpu.dot_dimension_numbers<[2], [2], [1], [1], [0, 0, 0, 1, 1, 1], [0], [0]>} : vector<2x8x8xbf16>, vector<2x8x8xbf16>, vector<2x8x8xf32> -> vector<2x8x8xf32>
    "tpu.trace_stop"() : () -> ()
    %104 = vector.broadcast %5 : vector<2x1x8xf32> to vector<2x8x8xf32>
    %105 = arith.addf %103, %104 : vector<2x8x8xf32>
    %cst_28 = arith.constant dense<0xFF800000> : vector<2x8xf32>
    %106 = vector.multi_reduction <maximumf>, %105, %cst_28 [2] : vector<2x8x8xf32> to vector<2x8xf32>
    %107 = vector.shape_cast %106 : vector<2x8xf32> to vector<2x8x1xf32>
    %108 = vector.broadcast %107 : vector<2x8x1xf32> to vector<2x8x8xf32>
    %109 = arith.subf %105, %108 : vector<2x8x8xf32>
    %110 = math.exp %109 : vector<2x8x8xf32>
    %cst_29 = arith.constant dense<0.000000e+00> : vector<2x8xf32>
    %111 = vector.multi_reduction <add>, %110, %cst_29 [2] : vector<2x8x8xf32> to vector<2x8xf32>
    %112 = vector.shape_cast %111 : vector<2x8xf32> to vector<2x8x1xf32>
    %113 = arith.truncf %110 : vector<2x8x8xf32> to vector<2x8x8xbf16>
    "tpu.trace_start"() <{level = 10 : i32, message = "bqk,bkd->bqd"}> : () -> ()
    %cst_30 = arith.constant dense<0.000000e+00> : vector<2x8x8xf32>
    %114 = tpu.matmul %113, %102, %cst_30 {dimension_numbers = #tpu.dot_dimension_numbers<[2], [1], [1], [2], [0, 0, 0, 1, 1, 2], [0], [0]>} : vector<2x8x8xbf16>, vector<2x8x8xbf16>, vector<2x8x8xf32> -> vector<2x8x8xf32>
    "tpu.trace_stop"() : () -> ()
    %115 = tpu.reciprocal %112 {approx = true} : vector<2x8x1xf32> -> vector<2x8x1xf32>
    %116 = vector.broadcast %115 : vector<2x8x1xf32> to vector<2x8x8xf32>
    %117 = arith.mulf %114, %116 : vector<2x8x8xf32>
    %118 = vector.shape_cast %117 : vector<2x8x8xf32> to vector<16x8xf32>
    %119 = arith.truncf %118 : vector<16x8xf32> to vector<16x8xbf16>
    %c0_31 = arith.constant 0 : index
    %c24 = arith.constant 24 : index
    %120 = vector.load %arg12[%c0_31, %c24] : memref<16x32xbf16, #tpu.memory_space<vmem>>, vector<16x8xbf16>
    tpu.vector_store %arg12[%c0_31, %c24], %119 {strides = array<i32>} : memref<16x32xbf16, #tpu.memory_space<vmem>>, vector<16x8xbf16>,
    %c0_32 = arith.constant 0 : index
    %c0_33 = arith.constant 0 : index
    %c0_34 = arith.constant 0 : index
    %121 = vector.load %arg6[%c0_32, %c0_33, %c0_34] : memref<1x6x32xf32, #tpu.memory_space<vmem>>, vector<1x6x32xf32>
    %122 = vector.shape_cast %121 : vector<1x6x32xf32> to vector<6x32xf32>
    %123 = vector.extract_strided_slice %122 {offsets = [0, 0], sizes = [1, 32], strides = [1, 1]} : vector<6x32xf32> to vector<1x32xf32>
    %124 = vector.extract_strided_slice %122 {offsets = [1, 0], sizes = [1, 32], strides = [1, 1]} : vector<6x32xf32> to vector<1x32xf32>
    %125 = vector.extract_strided_slice %122 {offsets = [2, 0], sizes = [1, 32], strides = [1, 1]} : vector<6x32xf32> to vector<1x32xf32>
    %126 = vector.extract_strided_slice %122 {offsets = [3, 0], sizes = [1, 32], strides = [1, 1]} : vector<6x32xf32> to vector<1x32xf32>
    %127 = vector.extract_strided_slice %122 {offsets = [4, 0], sizes = [1, 32], strides = [1, 1]} : vector<6x32xf32> to vector<1x32xf32>
    %128 = vector.extract_strided_slice %122 {offsets = [5, 0], sizes = [1, 32], strides = [1, 1]} : vector<6x32xf32> to vector<1x32xf32>
    %c0_35 = arith.constant 0 : index
    %c0_36 = arith.constant 0 : index
    %129 = vector.load %arg12[%c0_35, %c0_36] : memref<16x32xbf16, #tpu.memory_space<vmem>>, vector<16x32xbf16>
    %c0_37 = arith.constant 0 : index
    %c0_38 = arith.constant 0 : index
    %c0_39 = arith.constant 0 : index
    %130 = vector.load %arg5[%c0_37, %c0_38, %c0_39] : memref<1x32x32xbf16, #tpu.memory_space<vmem>>, vector<1x32x32xbf16>
    %131 = vector.shape_cast %130 : vector<1x32x32xbf16> to vector<32x32xbf16>
    %cst_40 = arith.constant dense<0.000000e+00> : vector<16x32xf32>
    %132 = tpu.matmul %129, %131, %cst_40 {dimension_numbers = #tpu.dot_dimension_numbers<[1], [0], [0], [1], [0, 0, 1, 1], [], []>} : vector<16x32xbf16>, vector<32x32xbf16>, vector<16x32xf32> -> vector<16x32xf32>
    %133 = vector.broadcast %123 : vector<1x32xf32> to vector<16x32xf32>
    %134 = arith.addf %132, %133 : vector<16x32xf32>
    %135 = arith.addf %134, %3 : vector<16x32xf32>
    %cst_41 = arith.constant dense<0.000000e+00> : vector<16xf32>
    %136 = vector.multi_reduction <add>, %135, %cst_41 [1] : vector<16x32xf32> to vector<16xf32>
    %137 = vector.shape_cast %136 : vector<16xf32> to vector<16x1xf32>
    %cst_42 = arith.constant 3.200000e+01 : f32
    %138 = vector.broadcast %cst_42 : f32 to vector<16x1xf32>
    %139 = arith.divf %137, %138 : vector<16x1xf32>
    %140 = vector.broadcast %139 : vector<16x1xf32> to vector<16x32xf32>
    %141 = arith.subf %135, %140 : vector<16x32xf32>
    %142 = arith.mulf %141, %141 : vector<16x32xf32>
    %cst_43 = arith.constant dense<0.000000e+00> : vector<16xf32>
    %143 = vector.multi_reduction <add>, %142, %cst_43 [1] : vector<16x32xf32> to vector<16xf32>
    %144 = vector.shape_cast %143 : vector<16xf32> to vector<16x1xf32>
    %cst_44 = arith.constant 3.200000e+01 : f32
    %145 = vector.broadcast %cst_44 : f32 to vector<16x1xf32>
    %146 = arith.divf %144, %145 : vector<16x1xf32>
    %cst_45 = arith.constant 9.99999996E-13 : f32
    %147 = vector.broadcast %cst_45 : f32 to vector<16x1xf32>
    %148 = arith.addf %146, %147 : vector<16x1xf32>
    %149 = math.rsqrt %148 : vector<16x1xf32>
    %150 = vector.broadcast %149 : vector<16x1xf32> to vector<16x32xf32>
    %151 = arith.mulf %141, %150 : vector<16x32xf32>
    %152 = vector.broadcast %124 : vector<1x32xf32> to vector<16x32xf32>
    %153 = arith.mulf %151, %152 : vector<16x32xf32>
    %154 = vector.broadcast %125 : vector<1x32xf32> to vector<16x32xf32>
    %155 = arith.addf %153, %154 : vector<16x32xf32>
    %156 = arith.truncf %155 : vector<16x32xf32> to vector<16x32xbf16>
    %157 = vector.shape_cast %126 : vector<1x32xf32> to vector<1x32xf32>
    %158 = vector.broadcast %157 : vector<1x32xf32> to vector<16x32xf32>
    %c0_46 = arith.constant 0 : index
    %c0_47 = arith.constant 0 : index
    %c0_48 = arith.constant 0 : index
    %159 = vector.load %arg7[%c0_46, %c0_47, %c0_48] : memref<1x32x128xbf16, #tpu.memory_space<vmem>>, vector<1x32x128xbf16>
    %160 = vector.shape_cast %159 : vector<1x32x128xbf16> to vector<32x128xbf16>
    %cst_49 = arith.constant dense<0.000000e+00> : vector<16x128xf32>
    %161 = tpu.matmul %156, %160, %cst_49 {dimension_numbers = #tpu.dot_dimension_numbers<[1], [0], [0], [1], [0, 0, 1, 1], [], []>} : vector<16x32xbf16>, vector<32x128xbf16>, vector<16x128xf32> -> vector<16x128xf32>
    %c0_50 = arith.constant 0 : index
    %c0_51 = arith.constant 0 : index
    %c0_52 = arith.constant 0 : index
    %162 = vector.load %arg8[%c0_50, %c0_51, %c0_52] : memref<1x1x128xf32, #tpu.memory_space<vmem>>, vector<1x1x128xf32>
    %163 = vector.shape_cast %162 : vector<1x1x128xf32> to vector<1x128xf32>
    %164 = vector.broadcast %163 : vector<1x128xf32> to vector<16x128xf32>
    %165 = arith.addf %161, %164 : vector<16x128xf32>
    %cst_53 = arith.constant 5.000000e-01 : f32
    %166 = vector.broadcast %cst_53 : f32 to vector<16x128xf32>
    %167 = arith.mulf %166, %165 : vector<16x128xf32>
    %cst_54 = arith.constant 4.471500e-02 : f32
    %168 = vector.broadcast %cst_54 : f32 to vector<16x128xf32>
    %169 = arith.mulf %168, %165 : vector<16x128xf32>
    %170 = arith.mulf %169, %165 : vector<16x128xf32>
    %171 = arith.mulf %170, %165 : vector<16x128xf32>
    %172 = arith.addf %165, %171 : vector<16x128xf32>
    %cst_55 = arith.constant 0.797884583 : f32
    %173 = vector.broadcast %cst_55 : f32 to vector<16x128xf32>
    %174 = arith.mulf %173, %172 : vector<16x128xf32>
    %175 = math.tanh %174 : vector<16x128xf32>
    %cst_56 = arith.constant 1.000000e+00 : f32
    %176 = vector.broadcast %cst_56 : f32 to vector<16x128xf32>
    %177 = arith.addf %176, %175 : vector<16x128xf32>
    %178 = arith.mulf %167, %177 : vector<16x128xf32>
    %179 = arith.truncf %178 : vector<16x128xf32> to vector<16x128xbf16>
    %c0_57 = arith.constant 0 : index
    %c0_58 = arith.constant 0 : index
    %c0_59 = arith.constant 0 : index
    %180 = vector.load %arg9[%c0_57, %c0_58, %c0_59] : memref<1x128x32xbf16, #tpu.memory_space<vmem>>, vector<1x128x32xbf16>
    %181 = vector.shape_cast %180 : vector<1x128x32xbf16> to vector<128x32xbf16>
    %cst_60 = arith.constant dense<0.000000e+00> : vector<16x32xf32>
    %182 = tpu.matmul %179, %181, %cst_60 {dimension_numbers = #tpu.dot_dimension_numbers<[1], [0], [0], [1], [0, 0, 1, 1], [], []>} : vector<16x128xbf16>, vector<128x32xbf16>, vector<16x32xf32> -> vector<16x32xf32>
    %183 = arith.addf %158, %182 : vector<16x32xf32>
    %184 = arith.addf %183, %155 : vector<16x32xf32>
    %cst_61 = arith.constant dense<0.000000e+00> : vector<16xf32>
    %185 = vector.multi_reduction <add>, %184, %cst_61 [1] : vector<16x32xf32> to vector<16xf32>
    %186 = vector.shape_cast %185 : vector<16xf32> to vector<16x1xf32>
    %cst_62 = arith.constant 3.200000e+01 : f32
    %187 = vector.broadcast %cst_62 : f32 to vector<16x1xf32>
    %188 = arith.divf %186, %187 : vector<16x1xf32>
    %189 = vector.broadcast %188 : vector<16x1xf32> to vector<16x32xf32>
    %190 = arith.subf %184, %189 : vector<16x32xf32>
    %191 = arith.mulf %190, %190 : vector<16x32xf32>
    %cst_63 = arith.constant dense<0.000000e+00> : vector<16xf32>
    %192 = vector.multi_reduction <add>, %191, %cst_63 [1] : vector<16x32xf32> to vector<16xf32>
    %193 = vector.shape_cast %192 : vector<16xf32> to vector<16x1xf32>
    %cst_64 = arith.constant 3.200000e+01 : f32
    %194 = vector.broadcast %cst_64 : f32 to vector<16x1xf32>
    %195 = arith.divf %193, %194 : vector<16x1xf32>
    %cst_65 = arith.constant 9.99999996E-13 : f32
    %196 = vector.broadcast %cst_65 : f32 to vector<16x1xf32>
    %197 = arith.addf %195, %196 : vector<16x1xf32>
    %198 = math.rsqrt %197 : vector<16x1xf32>
    %199 = vector.broadcast %198 : vector<16x1xf32> to vector<16x32xf32>
    %200 = arith.mulf %190, %199 : vector<16x32xf32>
    %201 = vector.broadcast %127 : vector<1x32xf32> to vector<16x32xf32>
    %202 = arith.mulf %200, %201 : vector<16x32xf32>
    %203 = vector.broadcast %128 : vector<1x32xf32> to vector<16x32xf32>
    %204 = arith.addf %202, %203 : vector<16x32xf32>
    %c1_i32 = arith.constant 1 : i32
    %205 = arith.cmpi slt, %arg0, %c1_i32 : i32
    %206 = arith.extui %205 : i1 to i32
    %c0_i32_66 = arith.constant 0 : i32
    %207 = arith.cmpi ne, %206, %c0_i32_66 : i32
    scf.if %207 {
      %c0_69 = arith.constant 0 : index
      %c0_70 = arith.constant 0 : index
      %211 = vector.load %arg11[%c0_69, %c0_70] : memref<16x32xf32, #tpu.memory_space<vmem>>, vector<16x32xf32>
      tpu.vector_store %arg11[%c0_69, %c0_70], %204 {strides = array<i32>} : memref<16x32xf32, #tpu.memory_space<vmem>>, vector<16x32xf32>,
    } else {
    }
    %c1_i32_67 = arith.constant 1 : i32
    %208 = arith.cmpi eq, %arg0, %c1_i32_67 : i32
    %209 = arith.extui %208 : i1 to i32
    %c0_i32_68 = arith.constant 0 : i32
    %210 = arith.cmpi ne, %209, %c0_i32_68 : i32
    scf.if %210 {
      %211 = vector.shape_cast %204 : vector<16x32xf32> to vector<2x8x32xf32>
      %c0_69 = arith.constant 0 : index
      %c0_70 = arith.constant 0 : index
      %c0_71 = arith.constant 0 : index
      %212 = vector.load %arg10[%c0_69, %c0_70, %c0_71] : memref<2x8x32xf32, #tpu.memory_space<vmem>>, vector<2x8x32xf32>
      tpu.vector_store %arg10[%c0_69, %c0_70, %c0_71], %211 {strides = array<i32>} : memref<2x8x32xf32, #tpu.memory_space<vmem>>, vector<2x8x32xf32>,
    } else {
    }
    return
  }
  func.func @transform_1(%arg0: i32) -> (i32, i32, i32) {
    %c0_i32 = arith.constant 0 : i32
    %c0_i32_0 = arith.constant 0 : i32
    %c0_i32_1 = arith.constant 0 : i32
    %c0_i32_2 = arith.constant 0 : i32
    return %c0_i32, %c0_i32_0, %c0_i32_1 : i32, i32, i32
  }
  func.func @transform_2(%arg0: i32) -> (i32, i32, i32) {
    %c0_i32 = arith.constant 0 : i32
    %c0_i32_0 = arith.constant 0 : i32
    %c0_i32_1 = arith.constant 0 : i32
    return %arg0, %c0_i32, %c0_i32_0 : i32, i32, i32
  }
  func.func @transform_3(%arg0: i32) -> (i32, i32, i32) {
    %c0_i32 = arith.constant 0 : i32
    %c0_i32_0 = arith.constant 0 : i32
    %c0_i32_1 = arith.constant 0 : i32
    return %arg0, %c0_i32, %c0_i32_0 : i32, i32, i32
  }
  func.func @transform_4(%arg0: i32) -> (i32, i32, i32) {
    %c0_i32 = arith.constant 0 : i32
    %c0_i32_0 = arith.constant 0 : i32
    %c0_i32_1 = arith.constant 0 : i32
    return %arg0, %c0_i32, %c0_i32_0 : i32, i32, i32
  }
  func.func @transform_5(%arg0: i32) -> (i32, i32, i32) {
    %c0_i32 = arith.constant 0 : i32
    %c0_i32_0 = arith.constant 0 : i32
    %c0_i32_1 = arith.constant 0 : i32
    return %arg0, %c0_i32, %c0_i32_0 : i32, i32, i32
  }
  func.func @transform_6(%arg0: i32) -> (i32, i32, i32) {
    %c0_i32 = arith.constant 0 : i32
    %c0_i32_0 = arith.constant 0 : i32
    %c0_i32_1 = arith.constant 0 : i32
    return %arg0, %c0_i32, %c0_i32_0 : i32, i32, i32
  }
  func.func @transform_7(%arg0: i32) -> (i32, i32, i32) {
    %c0_i32 = arith.constant 0 : i32
    %c0_i32_0 = arith.constant 0 : i32
    %c0_i32_1 = arith.constant 0 : i32
    return %arg0, %c0_i32, %c0_i32_0 : i32, i32, i32
  }
  func.func @transform_8(%arg0: i32) -> (i32, i32, i32) {
    %c0_i32 = arith.constant 0 : i32
    %c0_i32_0 = arith.constant 0 : i32
    %c0_i32_1 = arith.constant 0 : i32
    return %arg0, %c0_i32, %c0_i32_0 : i32, i32, i32
  }
  func.func @transform_9(%arg0: i32) -> (i32, i32, i32) {
    %c0_i32 = arith.constant 0 : i32
    %c0_i32_0 = arith.constant 0 : i32
    %c0_i32_1 = arith.constant 0 : i32
    %c0_i32_2 = arith.constant 0 : i32
    return %c0_i32, %c0_i32_0, %c0_i32_1 : i32, i32, i32
  }
}

</mosaic_0001>

<bundles_post_ra>
// kernel: tpu_custom_call.1
= control target key start
LH: loop header
LB: loop body
LE: loop exit
PB: predicated region body
PF: predicated region fallthrough
CT: control target
= control target key end

     0   :  { %14 = vsyncpa [#allocation6], 0  ;;  %s1711_s30 = smov 0   ;;  %s1938_s0 = inlined_call_operand.vmem [shape: f32[16,32], index: 0, kind: input, shape index: {}]   ;;  %s1939_s1 = inlined_call_operand.vmem [shape: f32[2,1,8], index: 1, kind: input, shape index: {}]   ;;  %s1940_s2 = inlined_call_operand.vmem [shape: bf16[2,32,96], index: 2, kind: input, shape index: {}]   ;;  %s1941_s3 = inlined_call_operand.vmem [shape: f32[2,1,96], index: 3, kind: input, shape index: {}]   ;;  %s1942_s4 = inlined_call_operand.vmem [shape: bf16[2,32,32], index: 4, kind: input, shape index: {}]   ;;  %s1943_s5 = inlined_call_operand.vmem [shape: f32[2,6,32], index: 5, kind: input, shape index: {}]   ;;  %s1944_s6 = inlined_call_operand.vmem [shape: bf16[2,32,128], index: 6, kind: input, shape index: {}]   ;;  %s1945_s7 = inlined_call_operand.vmem [shape: f32[2,1,128], index: 7, kind: input, shape index: {}]   ;;  %s1946_s8 = inlined_call_operand.vmem [shape: bf16[2,128,32], index: 8, kind: input, shape index: {}]   ;;  %s1947_s9 = inlined_call_operand.hbm [shape: f32[2,8,32], index: 9, kind: output, shape index: {}]  }
   0x1 LB: > { %s1717_s10 = sadd.s32 4294967295, %s1642_s30   ;;  %p1405_p0 = scmp.ge.s32.totalorder %s1642_s30, 1  ;;  %s1642_s30 = sphi %s1711_s30, %s20_s30  }
   0x2   : > { %p314_p1 = scmp.lt.s32.totalorder %s1642_s30, 3 }
   0x4   : > { %p315_p2 = pnand %p1405_p0, %p314_p1 }
   0x5   : > { %p368_p3 = scmp.lt.s32.totalorder (!%p315_p2), %s1717_s10, 1  ;;  %p1415_p4 = scmp.ne.s32.totalorder (!%p315_p2), %s1717_s10, 0 }
   0x6   : > { %318 = sbr.rel (%p315_p2) target bundleno = 1899 (0x76b), region = 52 }
   0xb   : > { %s1723_s11 = scalar_select %p368_p3, %s1717_s10, 1 }
   0xd   : > { %s1502_s12 = sshll.u32 %s1723_s11, 4  ;;  %s375_s15 = scalar_lea.vmem %s1941_s3, %s1723_s11 }
   0xe   : > { %s372_s18 = scalar_lea.vmem %s1940_s2, %s1502_s12  ;;  %s1736_s21 = scalar_lea.vmem %s1942_s4, %s1502_s12 }
   0xf   : > { %s1410_s22 = sshll.u32 %s1723_s11, 3  ;;  %s1742_s25 = scalar_lea.vmem %s1944_s6, %s1502_s12 }
  0x10   : > { %s1747_s28 = scalar_lea.vmem %s1943_s5, %s1410_s22  ;;  %s392_s14 = scalar_lea.vmem %s1945_s7, %s1723_s11 }
  0x11   : > { %s1505_s16 = sshll.u32 %s1723_s11, 6  ;;  %402 = sbr.rel (%p1415_p4) target bundleno = 28 (0x1c), region = 56 }
  0x12   : > { %s1757_s20 = scalar_lea.vmem %s1946_s8, %s1505_s16 }
  0x16   : > { %v413_v0 = vld [vmem:[%s1938_s0] sm:$0xff]  ;;  %v415_v1 = vld [vmem:[%s1938_s0 + $0x8] sm:$0xff] }
  0x17   : > { %414 = vst [vmem:[#allocation2] sm:$0xff] %v413_v0 }
  0x18   : > { %416 = vst [vmem:[#allocation2 + $0x8] sm:$0xff] %v415_v1 }
  0x19   : > { %422 = vsyncadd [#allocation4], 256 }
  0x1a   : > { %1634 = dma.done.wait [#allocation4], 256 }
  0x1b   : > { %1635 = vsyncadd [#allocation4], 4294967040 }
  0x1c PF: > { %v1507_v2 = vld [vmem:[%s372_s18 + $0x8] sm:$0xff]  ;;  %v1506_v3 = vld [vmem:[%s372_s18] sm:$0xff]  ;;  %vm451_vm0 = vcmask 261120   ;;  %s1644_s18 = smov 88   ;;  %s1645_s26 = smov 96   ;;  %vm482_vm1 = vcmask 64512  }
  0x1d   : > { %461 = vmatpush.bf16.msra.mxu0 %v1507_v2  ;;  %v1552_v7 = vld [vmem:[%s375_s15] ss:$0 sm:$0xff]  ;;  %s1646_s15 = smov 120   ;;  %s1647_s27 = smov 80   ;;  %vm551_vm2 = vcmask 1043456   ;;  %vm595_vm3 = vcmask 60416  }
  0x1e   : > { %v1766_v4 = vld [vmem:[#allocation2] sm:$0xff]  ;;  %s1648_s29 = smov 112   ;;  %s1649_s13 = smov 72   ;;  %vm720_vm4 = vcmask 126016   ;;  %vm845_vm5 = vcmask 191616   ;;  %vm970_vm6 = vcmask 257216  }
  0x1f   : > { %v1768_v5 = vld [vmem:[#allocation2 + $0x8] sm:$0xff]  ;;  %s1650_s16 = smov 104   ;;  %s1651_s17 = smov 56   ;;  %v1553_v44 = vld [vmem:[%s1939_s1] ss:$0 sm:$0xff] }
  0x20   : > { %v428_v6 = vpack.c.bf16 %v1768_v5, %v1766_v4  ;;  %s1652_s19 = smov 64   ;;  %v1554_v53 = vld [vmem:[%s1939_s1 + $0x1] ss:$0 sm:$0xff]  ;;  %p1495_p5 = scmp.ge.s32.totalorder %s1717_s10, 1 }
  0x21   : > { %462 = vmatpush.bf16.msra.mxu0 %v1506_v3 }
  0x24   : > { %1424 = vmatmul.msk.bf16.vlgmr.msra.gmra.mxu0 %vm451_vm0, %v428_v6 }
  0xa1   : > { %v464_v8 = vpop.f32.mrf.mxu0 }
  0xa2   : > { %v465_v9 = vadd.f32 %v1552_v7, %v464_v8 }
  0xa4   : > { %v469_v10 = vpack.c.bf16 %v465_v9, %v465_v9 }
  0xa6   : > { %v478_v11 = vunpack.c.l.b16 %v469_v10 }
  0xa8   : > { %v1773_v12 = vpack.c.b16 %v478_v11, %v478_v11 }
  0xa9   : > { %v466_v13 = vpop.f32.mrf.mxu0 }
  0xaa   : > { %v467_v14 = vadd.f32 %v1552_v7, %v466_v13  ;;  %600 = vrot.lane.b32.xlu1 %v1773_v12, %s1644_s18  ;;  %480 = vrot.lane.b32.xlu0 %v1773_v12, %s1645_s26 }
  0xac   : > { %v470_v15 = vpack.c.bf16 %v467_v14, %v467_v14 }
  0xae   : > { %v503_v16 = vunpack.c.l.b16 %v470_v15 }
  0xb0   : > { %v1777_v17 = vpack.c.b16 %v503_v16, %v503_v16 }
  0xb2   : > { %623 = vrot.lane.b32.xlu2 %v1777_v17, %s1644_s18  ;;  %598 = vrot.lane.b32.xlu1 %v1773_v12, %s1646_s15  ;;  %s1653_s18 = smov 48  }
  0xb3   : > { %505 = vrot.lane.b32.xlu0 %v1777_v17, %s1645_s26  ;;  %s1654_s26 = smov 40  }
  0xba   : > { %621 = vrot.lane.b32.xlu2 %v1777_v17, %s1646_s15  ;;  %748 = vrot.lane.b32.xlu1 %v1777_v17, %s1647_s27  ;;  %s1655_s15 = smov 8  }
  0xbb   : > { %725 = vrot.lane.b32.xlu0 %v1773_v12, %s1647_s27  ;;  %s1656_s27 = smov 16  }
  0xc2   : > { %723 = vrot.lane.b32.xlu2 %v1773_v12, %s1648_s29  ;;  %850 = vrot.lane.b32.xlu1 %v1773_v12, %s1649_s13 }
  0xc3   : > { %746 = vrot.lane.b32.xlu0 %v1777_v17, %s1648_s29  ;;  %s1657_s29 = smov 24  }
  0xca   : > { %873 = vrot.lane.b32.xlu2 %v1777_v17, %s1649_s13  ;;  %871 = vrot.lane.b32.xlu1 %v1777_v17, %s1650_s16 }
  0xcb   : > { %848 = vrot.lane.b32.xlu0 %v1773_v12, %s1650_s16 }
  0xd2   : > { %685 = vrot.lane.b32.xlu1 %v1777_v17, %s1651_s17 }
  0xd3   : > { %546 = vrot.lane.b32.xlu0 %v1773_v12, %s1652_s19 }
  0xdb   : > { %568 = vrot.lane.b32.xlu0 %v1777_v17, %s1652_s19 }
 0x10c   : > { %v624_v18 = vpop.permute.xlu2 %623 }
 0x10d   : > { %v629_v24 = vsel %vm482_vm1, %v624_v18, 0 }
 0x114   : > { %v622_v23 = vpop.permute.xlu2 %621 }
 0x11c   : > { %v601_v19 = vpop.permute.xlu1 %600  ;;  %v481_v20 = vpop.permute.xlu0 %480 }
 0x11d   : > { %v606_v21 = vsel %vm482_vm1, %v601_v19, 0  ;;  %v487_v22 = vsel %vm482_vm1, %v481_v20, 0  ;;  %v724_v28 = vpop.permute.xlu2 %723 }
 0x11e   : > { %615 = vmatpush.bf16.xpose.msrb.mxu0 %v606_v21  ;;  %496 = vmatpush.bf16.xpose.msra.mxu1 %v487_v22 }
 0x124   : > { %v599_v25 = vpop.permute.xlu1 %598 }
 0x125   : > { %v506_v26 = vpop.permute.xlu0 %505  ;;  %1429 = vmatmul.msk.bf16.vlgmr.msrb.gmra.mxu0 %vm482_vm1, %v599_v25  ;;  %1425 = vmatmul.msk.bf16.vlgmr.msra.gmra.mxu1 %vm482_vm1, %v469_v10  ;;  %v874_v33 = vpop.permute.xlu2 %873 }
 0x126   : > { %638 = vmatpush.bf16.xpose.msrb.mxu1 %v629_v24  ;;  %v511_v27 = vsel %vm482_vm1, %v506_v26, 0  ;;  %v879_v37 = vsel %vm482_vm1, %v874_v33, 0 }
 0x127   : > { %520 = vmatpush.bf16.xpose.msra.mxu2 %v511_v27 }
 0x12c   : > { %v749_v29 = vpop.permute.xlu1 %748 }
 0x12d   : > { %v754_v30 = vsel %vm482_vm1, %v749_v29, 0  ;;  %v726_v31 = vpop.permute.xlu0 %725 }
 0x12e   : > { %v731_v32 = vsel %vm482_vm1, %v726_v31, 0  ;;  %1426 = vmatmul.msk.bf16.vlgmr.msra.gmra.mxu2 %vm482_vm1, %v470_v15  ;;  %763 = vmatpush.bf16.xpose.msra.mxu1 %v754_v30 }
 0x12f   : > { %740 = vmatpush.bf16.xpose.msra.mxu0 %v731_v32 }
 0x134   : > { %v851_v34 = vpop.permute.xlu1 %850 }
 0x135   : > { %v856_v35 = vsel %vm482_vm1, %v851_v34, 0  ;;  %v747_v36 = vpop.permute.xlu0 %746  ;;  %1430 = vmatmul.msk.bf16.vlgmr.msrb.gmra.mxu1 %vm482_vm1, %v622_v23 }
 0x136   : > { %1433 = vmatmul.msk.bf16.vlgmr.msra.gmra.mxu0 %vm482_vm1, %v724_v28  ;;  %888 = vmatpush.bf16.xpose.msrb.mxu1 %v879_v37 }
 0x137   : > { %865 = vmatpush.bf16.xpose.msrb.mxu0 %v856_v35 }
 0x13c   : > { %v872_v43 = vpop.permute.xlu1 %871 }
 0x13d   : > { %v849_v38 = vpop.permute.xlu0 %848 }
 0x144   : > { %v686_v24 = vpop.permute.xlu1 %685 }
 0x145   : > { %v547_v39 = vpop.permute.xlu0 %546  ;;  %1434 = vmatmul.msk.bf16.vlgmr.msra.gmra.mxu1 %vm482_vm1, %v747_v36  ;;  %v691_v37 = vsel %vm551_vm2, %v686_v24, 0 }
 0x146   : > { %1437 = vmatmul.msk.bf16.vlgmr.msrb.gmra.mxu0 %vm482_vm1, %v849_v38  ;;  %v553_v40 = vsel %vm551_vm2, %v547_v39, 0 }
 0x147   : > { %562 = vmatpush.bf16.msra.mxu3 %v553_v40 }
 0x14d   : > { %v569_v41 = vpop.permute.xlu0 %568 }
 0x14e   : > { %v574_v42 = vsel %vm551_vm2, %v569_v41, 0 }
 0x14f   : > { %583 = vmatpush.bf16.msrb.mxu3 %v574_v42 }
 0x155   : > { %1438 = vmatmul.msk.bf16.vlgmr.msrb.gmra.mxu1 %vm482_vm1, %v872_v43 }
 0x1a2   : > { %v617_v45 = vpop.f32.mrf.mxu0  ;;  %v498_v46 = vpop.f32.mrf.mxu1 }
 0x1a3   : > { %v618_v47 = vadd.f32 %v1553_v44, %v617_v45  ;;  %v499_v48 = vadd.f32 %v1553_v44, %v498_v46 }
 0x1a5   : > { %v644_v49 = vsel %vm482_vm1, %v618_v47, -inf  ;;  %v526_v50 = vsel %vm482_vm1, %v499_v48, -inf }
 0x1a6   : > { %645 = vmax.xlane.f32.xlu0 %v644_v49  ;;  %527 = vmax.xlane.f32.xlu2 %v526_v50 }
 0x1aa   : > { %v619_v51 = vpop.f32.mrf.mxu0  ;;  %v500_v52 = vpop.f32.mrf.mxu1 }
 0x1b1   : > { %v522_v54 = vpop.f32.mrf.mxu2 }
 0x1b2   : > { %v523_v55 = vadd.f32 %v1554_v53, %v522_v54  ;;  %v640_v56 = vpop.f32.mrf.mxu1 }
 0x1b3   : > { %v742_v57 = vpop.f32.mrf.mxu0  ;;  %v641_v59 = vadd.f32 %v1554_v53, %v640_v56 }
 0x1b4   : > { %v529_v58 = vsel %vm482_vm1, %v523_v55, -inf  ;;  %v1828_v10 = vadd.f32 %v1553_v44, %v742_v57 }
 0x1b5   : > { %530 = vmax.xlane.f32.xlu1 %v529_v58  ;;  %v647_v63 = vsel %vm482_vm1, %v641_v59, -inf }
 0x1b6   : > { %v769_v11 = vsel %vm482_vm1, %v1828_v10, -inf }
 0x1b9   : > { %v524_v60 = vpop.f32.mrf.mxu2 }
 0x1ba   : > { %v642_v61 = vpop.f32.mrf.mxu1 }
 0x1bb   : > { %v744_v62 = vpop.f32.mrf.mxu0 }
 0x1bd   : > { %648 = vmax.xlane.f32.xlu1 %v647_v63 }
 0x1be   : > { %664 = vrot.lane.b32.xlu2 %v1773_v12, %s1651_s17 }
 0x1c2   : > { %v765_v0 = vpop.f32.mrf.mxu1 }
 0x1c3   : > { %v867_v1 = vpop.f32.mrf.mxu0  ;;  %v766_v2 = vadd.f32 %v1554_v53, %v765_v0 }
 0x1c4   : > { %v1832_v13 = vadd.f32 %v1553_v44, %v867_v1 }
 0x1c5   : > { %v772_v3 = vsel %vm482_vm1, %v766_v2, -inf }
 0x1c6   : > { %773 = vmax.xlane.f32.xlu0 %v772_v3  ;;  %v894_v14 = vsel %vm482_vm1, %v1832_v13, -inf }
 0x1ca   : > { %v767_v6 = vpop.f32.mrf.mxu1 }
 0x1cb   : > { %v869_v7 = vpop.f32.mrf.mxu0 }
 0x1d2   : > { %v890_v8 = vpop.f32.mrf.mxu1 }
 0x1d3   : > { %v1836_v15 = vadd.f32 %v1554_v53, %v890_v8 }
 0x1d5   : > { %v897_v16 = vsel %vm482_vm1, %v1836_v15, -inf }
 0x1d6   : > { %810 = vrot.lane.b32.xlu1 %v1777_v17, %s1653_s18 }
 0x1da   : > { %v892_v9 = vpop.f32.mrf.mxu1  ;;  %789 = vrot.lane.b32.xlu0 %v1773_v12, %s1653_s18 }
 0x1e7   : > { %770 = vmax.xlane.f32.xlu2 %v769_v11 }
 0x1ff   : > { %914 = vrot.lane.b32.xlu2 %v1773_v12, %s1654_s26 }
 0x200   : > { %895 = vmax.xlane.f32.xlu1 %v894_v14 }
 0x204   : > { %898 = vmax.xlane.f32.xlu0 %v897_v16 }
 0x207   : > { %935 = vrot.lane.b32.xlu2 %v1777_v17, %s1654_s26 }
 0x219   : > { %v646_v18 = vpop.xlane.xlu0 %645  ;;  %v528_v19 = vpop.xlane.xlu2 %527 }
 0x21a   : > { %v650_v20 = vsub.f32 %v618_v47, %v646_v18  ;;  %v532_v21 = vsub.f32 %v499_v48, %v528_v19 }
 0x21c   : > { %v652_v22 = vmul.f32 1.442695, %v650_v20  ;;  %v534_v23 = vmul.f32 1.442695, %v532_v21 }
 0x21e   : > { %1556 = vpow2.f32 %v652_v22 }
 0x21f   : > { %1558 = vpow2.f32 %v534_v23 }
 0x221   : > { %v665_v27 = vpop.permute.xlu2 %664 }
 0x222   : > { %v670_v29 = vsel %vm551_vm2, %v665_v27, 0 }
 0x224   : > { %v1557_v25 = vpop.eup %1556 }
 0x225   : > { %v1559_v26 = vpop.eup %1558  ;;  %v656_v12 = vsel %vm482_vm1, %v1557_v25, 0.0  ;;  %v662_v45 = vpack.c.bf16 %v1557_v25, %v1557_v25 }
 0x226   : > { %657 = vadd.xlane.f32.xlu1 %v656_v12  ;;  %v544_v28 = vpack.c.bf16 %v1559_v26, %v1559_v26  ;;  %v538_v43 = vsel %vm482_vm1, %v1559_v26, 0.0 }
 0x228   : > { %v531_v30 = vpop.xlane.xlu1 %530  ;;  %1427 = vmatmul.msk.bf16.vlgmr.msra.gmra.mxu3 %vm482_vm1, %v544_v28 }
 0x229   : > { %v533_v17 = vsub.f32 %v523_v55, %v531_v30  ;;  %679 = vmatpush.bf16.msra.mxu3 %v670_v29 }
 0x22b   : > { %v536_v31 = vmul.f32 1.442695, %v533_v17 }
 0x22d   : > { %1560 = vpow2.f32 %v536_v31 }
 0x230   : > { %v649_v32 = vpop.xlane.xlu1 %648 }
 0x231   : > { %v651_v33 = vsub.f32 %v641_v59, %v649_v32 }
 0x233   : > { %v1845_v34 = vpop.eup %1560  ;;  %v654_v35 = vmul.f32 1.442695, %v651_v33 }
 0x234   : > { %v545_v36 = vpack.c.bf16 %v1845_v34, %v1845_v34 }
 0x235   : > { %1562 = vpow2.f32 %v654_v35 }
 0x238   : > { %1428 = vmatmul.msk.bf16.vlgmr.msrb.gmra.mxu3 %vm482_vm1, %v545_v36 }
 0x239   : > { %700 = vmatpush.bf16.msrb.mxu3 %v691_v37  ;;  %v774_v38 = vpop.xlane.xlu0 %773 }
 0x23a   : > { %v776_v40 = vsub.f32 %v766_v2, %v774_v38 }
 0x23b   : > { %v1563_v39 = vpop.eup %1562 }
 0x23c   : > { %v659_v41 = vsel %vm482_vm1, %v1563_v39, 0.0  ;;  %v779_v42 = vmul.f32 1.442695, %v776_v40  ;;  %v663_v51 = vpack.c.bf16 %v1563_v39, %v1563_v39 }
 0x23d   : > { %660 = vadd.xlane.f32.xlu0 %v659_v41 }
 0x23e   : > { %1564 = vpow2.f32 %v779_v42 }
 0x244   : > { %v1565_v44 = vpop.eup %1564 }
 0x245   : > { %539 = vadd.xlane.f32.xlu0 %v538_v43  ;;  %v784_v46 = vsel %vm482_vm1, %v1565_v44, 0.0  ;;  %v788_v58 = vpack.c.bf16 %v1565_v44, %v1565_v44 }
 0x246   : > { %785 = vadd.xlane.f32.xlu1 %v784_v46 }
 0x248   : > { %v811_v47 = vpop.permute.xlu1 %810  ;;  %1431 = vmatmul.msk.bf16.vlgmr.msra.gmra.mxu3 %vm482_vm1, %v662_v45 }
 0x249   : > { %v816_v48 = vsel %vm551_vm2, %v811_v47, 0 }
 0x24a   : > { %825 = vmatpush.bf16.msra.mxu3 %v816_v48 }
 0x24c   : > { %v790_v49 = vpop.permute.xlu0 %789 }
 0x24d   : > { %v795_v50 = vsel %vm551_vm2, %v790_v49, 0 }
 0x24e   : > { %804 = vmatpush.bf16.msrb.mxu2 %v795_v50 }
 0x258   : > { %1432 = vmatmul.msk.bf16.vlgmr.msrb.gmra.mxu3 %vm482_vm1, %v663_v51 }
 0x25a   : > { %v771_v52 = vpop.xlane.xlu2 %770 }
 0x25b   : > { %v775_v53 = vsub.f32 %v1828_v10, %v771_v52 }
 0x25d   : > { %v777_v54 = vmul.f32 1.442695, %v775_v53 }
 0x25f   : > { %1566 = vpow2.f32 %v777_v54 }
 0x262   : > { %v915_v55 = vpop.permute.xlu2 %914 }
 0x263   : > { %v920_v56 = vsel %vm551_vm2, %v915_v55, 0 }
 0x264   : > { %929 = vmatpush.bf16.msra.mxu2 %v920_v56 }
 0x265   : > { %v1567_v57 = vpop.eup %1566 }
 0x266   : > { %v781_v59 = vsel %vm482_vm1, %v1567_v57, 0.0  ;;  %v787_v60 = vpack.c.bf16 %v1567_v57, %v1567_v57 }
 0x267   : > { %782 = vadd.xlane.f32.xlu2 %v781_v59 }
 0x268   : > { %1436 = vmatmul.msk.bf16.vlgmr.msra.gmra.mxu3 %vm482_vm1, %v788_v58  ;;  %1435 = vmatmul.msk.bf16.vlgmr.msrb.gmra.mxu2 %vm482_vm1, %v787_v60 }
 0x26a   : > { %v936_v61 = vpop.permute.xlu2 %935 }
 0x26b   : > { %v941_v62 = vsel %vm551_vm2, %v936_v61, 0 }
 0x26c   : > { %950 = vmatpush.bf16.msrb.mxu3 %v941_v62 }
 0x273   : > { %v896_v63 = vpop.xlane.xlu1 %895 }
 0x274   : > { %v900_v0 = vsub.f32 %v1832_v13, %v896_v63  ;;  %v541_v13 = vsel %vm482_vm1, %v1845_v34, 0.0  ;;  %v1510_v63 = vld [vmem:[%s1736_s21 + $0x8] sm:$0xff] }
 0x275   : > { %1007 = vmatpush.bf16.msra.mxu0 %v1510_v63 }
 0x276   : > { %v902_v1 = vmul.f32 1.442695, %v900_v0 }
 0x277   : > { %v899_v2 = vpop.xlane.xlu0 %898 }
 0x278   : > { %1568 = vpow2.f32 %v902_v1  ;;  %v901_v3 = vsub.f32 %v1836_v15, %v899_v2  ;;  %v1509_v2 = vld [vmem:[%s1736_s21] sm:$0xff] }
 0x279   : > { %1008 = vmatpush.bf16.msra.mxu0 %v1509_v2  ;;  %v1519_v2 = vld [vmem:[%s1757_s20 + $0x30] sm:$0xff] }
 0x27a   : > { %v904_v6 = vmul.f32 1.442695, %v901_v3 }
 0x27c   : > { %1570 = vpow2.f32 %v904_v6 }
 0x27e   : > { %v1569_v7 = vpop.eup %1568 }
 0x27f   : > { %v912_v8 = vpack.c.bf16 %v1569_v7, %v1569_v7  ;;  %v906_v9 = vsel %vm482_vm1, %v1569_v7, 0.0 }
 0x280   : > { %907 = vadd.xlane.f32.xlu0 %v906_v9  ;;  %v1880_v9 = vld [vmem:[%s1747_s28] sm:$0x3f] }
 0x281   : > { %1439 = vmatmul.msk.bf16.vlgmr.msra.gmra.mxu2 %vm482_vm1, %v912_v8 }
 0x282   : > { %v1571_v10 = vpop.eup %1570 }
 0x283   : > { %v913_v11 = vpack.c.bf16 %v1571_v10, %v1571_v10  ;;  %v909_v14 = vsel %vm482_vm1, %v1571_v10, 0.0  ;;  %v980_v10 = vperm.slane %v1880_v9, 0 }
 0x284   : > { %910 = vadd.xlane.f32.xlu1 %v909_v14 }
 0x285   : > { %1440 = vmatmul.msk.bf16.vlgmr.msrb.gmra.mxu3 %vm482_vm1, %v913_v11 }
 0x28c   : > { %542 = vadd.xlane.f32.xlu1 %v541_v13 }
 0x299   : > { %v658_v23 = vpop.xlane.xlu1 %657 }
 0x2ab   : > { %v564_v15 = vpop.f32.mrf.mxu3 }
 0x2b0   : > { %v661_v16 = vpop.xlane.xlu0 %660 }
 0x2b3   : > { %v566_v18 = vpop.f32.mrf.mxu3 }
 0x2b8   : > { %v540_v19 = vpop.xlane.xlu0 %539 }
 0x2b9   : > { %1572 = vrcp.f32 %v540_v19  ;;  %v786_v33 = vpop.xlane.xlu1 %785 }
 0x2ba   : > { %1574 = vrcp.f32 %v658_v23 }
 0x2bb   : > { %v585_v20 = vpop.f32.mrf.mxu3  ;;  %1576 = vrcp.f32 %v661_v16 }
 0x2bc   : > { %1578 = vrcp.f32 %v786_v33 }
 0x2bf   : > { %v1573_v21 = vpop.eup %1572 }
 0x2c0   : > { %v591_v22 = vmul.f32 %v1573_v21, %v564_v15  ;;  %v1575_v26 = vpop.eup %1574  ;;  %v1658_v21 = vmov 32.0  }
 0x2c1   : > { %v1577_v30 = vpop.eup %1576 }
 0x2c2   : > { %v593_v24 = vpack.c.bf16 %v591_v22, %v591_v22  ;;  %v1579_v36 = vpop.eup %1578 }
 0x2c3   : > { %v587_v25 = vpop.f32.mrf.mxu3 }
 0x2c4   : > { %596 = vst.msk [vmem:[#allocation3] sm:$0xf] %vm595_vm3, %v593_v24 }
 0x2cb   : > { %v681_v27 = vpop.f32.mrf.mxu3 }
 0x2cc   : > { %v708_v12 = vmul.f32 %v1575_v26, %v681_v27 }
 0x2ce   : > { %v710_v28 = vpack.c.bf16 %v708_v12, %v708_v12 }
 0x2d0   : > { %714 = vrot.lane.b32.xlu0 %v710_v28, %s1655_s15 }
 0x2d3   : > { %v683_v29 = vpop.f32.mrf.mxu3 }
 0x2da   : > { %v783_v34 = vpop.xlane.xlu2 %782 }
 0x2db   : > { %v702_v17 = vpop.f32.mrf.mxu3  ;;  %1580 = vrcp.f32 %v783_v34  ;;  %v1512_v34 = vld [vmem:[%s1742_s25 + $0x8] sm:$0xff] }
 0x2dc   : > { %v709_v31 = vmul.f32 %v1577_v30, %v702_v17  ;;  %1105 = vmatpush.bf16.msra.mxu1 %v1512_v34 }
 0x2de   : > { %v711_v32 = vpack.c.bf16 %v709_v31, %v709_v31 }
 0x2e0   : > { %716 = vrot.lane.b32.xlu1 %v711_v32, %s1655_s15 }
 0x2e1   : > { %v1581_v38 = vpop.eup %1580 }
 0x2e3   : > { %v704_v35 = vpop.f32.mrf.mxu3 }
 0x2eb   : > { %v827_v37 = vpop.f32.mrf.mxu3  ;;  %v806_v40 = vpop.f32.mrf.mxu2 }
 0x2ec   : > { %v834_v39 = vmul.f32 %v1579_v36, %v827_v37  ;;  %v833_v41 = vmul.f32 %v1581_v38, %v806_v40  ;;  %v1511_v38 = vld [vmem:[%s1742_s25] sm:$0xff] }
 0x2ed   : > { %1106 = vmatpush.bf16.msra.mxu1 %v1511_v38 }
 0x2ee   : > { %v836_v42 = vpack.c.bf16 %v834_v39, %v834_v39  ;;  %v835_v43 = vpack.c.bf16 %v833_v41, %v833_v41 }
 0x2f0   : > { %841 = vrot.lane.b32.xlu0 %v836_v42, %s1656_s27  ;;  %839 = vrot.lane.b32.xlu2 %v835_v43, %s1656_s27 }
 0x2f3   : > { %v829_v44 = vpop.f32.mrf.mxu3  ;;  %v808_v45 = vpop.f32.mrf.mxu2 }
 0x2f4   : > { %v908_v47 = vpop.xlane.xlu0 %907 }
 0x2f5   : > { %1582 = vrcp.f32 %v908_v47 }
 0x2f7   : > { %v911_v46 = vpop.xlane.xlu1 %910 }
 0x2fb   : > { %v1583_v49 = vpop.eup %1582 }
 0x2ff   : > { %v543_v48 = vpop.xlane.xlu1 %542 }
 0x300   : > { %1584 = vrcp.f32 %v543_v48 }
 0x301   : > { %1586 = vrcp.f32 %v911_v46 }
 0x302   : > { %1588 = vrcp.f32 %v1658_v21 }
 0x304   : > { %v931_v50 = vpop.f32.mrf.mxu2 }
 0x305   : > { %v958_v51 = vmul.f32 %v1583_v49, %v931_v50 }
 0x306   : > { %v1585_v52 = vpop.eup %1584 }
 0x307   : > { %v960_v53 = vpack.c.bf16 %v958_v51, %v958_v51  ;;  %v592_v54 = vmul.f32 %v1585_v52, %v585_v20  ;;  %v1587_v55 = vpop.eup %1586 }
 0x308   : > { %v952_v56 = vpop.f32.mrf.mxu3  ;;  %v1589_v22 = vpop.eup %1588 }
 0x309   : > { %964 = vrot.lane.b32.xlu0 %v960_v53, %s1657_s29  ;;  %v959_v57 = vmul.f32 %v1587_v55, %v952_v56  ;;  %v594_v58 = vpack.c.bf16 %v592_v54, %v592_v54  ;;  %v1024_v23 = vmul.f32 32.0, %v1589_v22  ;;  %vm1028_vm7 = vweird.f32 %v1589_v22 }
 0x30a   : > { %v1068_v54 = vperm.slane %v1880_v9, 1 }
 0x30b   : > { %v961_v59 = vpack.c.bf16 %v959_v57, %v959_v57  ;;  %597 = vst.msk [vmem:[#allocation3 + $0x4] sm:$0xf] %vm595_vm3, %v594_v58  ;;  %v1025_v24 = vsub.f32 1.0, %v1024_v23  ;;  %v1071_v58 = vperm.slane %v1880_v9, 2 }
 0x30c   : > { %v933_v60 = vpop.f32.mrf.mxu2 }
 0x30d   : > { %966 = vrot.lane.b32.xlu1 %v961_v59, %s1657_s29  ;;  %v1026_v25 = vmul.f32 %v1589_v22, %v1025_v24 }
 0x30f   : > { %v1027_v26 = vadd.f32 %v1589_v22, %v1026_v25 }
 0x310   : > { %v954_v61 = vpop.f32.mrf.mxu3 }
 0x342   : > { %v715_v62 = vpop.permute.xlu0 %714 }
 0x343   : > { %721 = vst.msk [vmem:[#allocation3] sm:$0xf] %vm720_vm4, %v715_v62 }
 0x34a   : > { %v840_v0 = vpop.permute.xlu2 %839 }
 0x34b   : > { %846 = vst.msk [vmem:[#allocation3] sm:$0xf] %vm845_vm5, %v840_v0 }
 0x352   : > { %v717_v1 = vpop.permute.xlu1 %716 }
 0x353   : > { %722 = vst.msk [vmem:[#allocation3 + $0x4] sm:$0xf] %vm720_vm4, %v717_v1  ;;  %v1520_v1 = vld [vmem:[%s1757_s20 + $0x38] sm:$0xff] }
 0x354   : > { %1196 = vmatpush.bf16.msrb.mxu2 %v1520_v1 }
 0x358   : > { %1197 = vmatpush.bf16.msrb.mxu2 %v1519_v2 }
 0x362   : > { %v842_v3 = vpop.permute.xlu0 %841 }
 0x363   : > { %847 = vst.msk [vmem:[#allocation3 + $0x4] sm:$0xf] %vm845_vm5, %v842_v3  ;;  %v1518_v3 = vld [vmem:[%s1757_s20 + $0x28] sm:$0xff] }
 0x364   : > { %1198 = vmatpush.bf16.msrb.mxu2 %v1518_v3 }
 0x37b   : > { %v965_v6 = vpop.permute.xlu0 %964 }
 0x37c   : > { %971 = vst.msk [vmem:[#allocation3] sm:$0xf] %vm970_vm6, %v965_v6  ;;  %v1517_v6 = vld [vmem:[%s1757_s20 + $0x20] sm:$0xff] }
 0x37d   : > { %1199 = vmatpush.bf16.msrb.mxu2 %v1517_v6  ;;  %v1258_v6 = vperm.slane %v1880_v9, 4 }
 0x37f   : > { %v967_v7 = vpop.permute.xlu1 %966 }
 0x380   : > { %972 = vst.msk [vmem:[#allocation3 + $0x4] sm:$0xf] %vm970_vm6, %v967_v7  ;;  %v1516_v7 = vld [vmem:[%s1757_s20 + $0x18] sm:$0xff] }
 0x381   : > { %1200 = vmatpush.bf16.msrb.mxu2 %v1516_v7 }
 0x387   : > { %v1508_v8 = vld [vmem:[#allocation3] sm:$0xff] }
 0x388   : > { %1453 = vmatmul.msk.bf16.vlgmr.msra.gmra.mxu0 %vm451_vm0, %v1508_v8  ;;  %v1515_v8 = vld [vmem:[%s1757_s20 + $0x10] sm:$0xff] }
 0x389   : > { %1201 = vmatpush.bf16.msrb.mxu2 %v1515_v8 }
 0x405   : > { %v1010_v11 = vpop.f32.mrf.mxu0 }
 0x406   : > { %v1011_v14 = vadd.f32 %v1010_v11, %v980_v10  ;;  %v1513_v11 = vld [vmem:[%s1757_s20] sm:$0xff] }
 0x408   : > { %v1015_v13 = vadd.f32 %v1011_v14, %v1766_v4  ;;  %v1887_v4 = vsel %vm1028_vm7, %v1589_v22, %v1027_v26  ;;  %v1555_v14 = vld [vmem:[%s392_s14] ss:$0 sm:$0xff] }
 0x40a   : > { %v1017_v15 = vsel %vm451_vm0, %v1015_v13, 0.0 }
 0x40b   : > { %1018 = vadd.xlane.f32.xlu0 %v1017_v15 }
 0x40d   : > { %v1012_v16 = vpop.f32.mrf.mxu0 }
 0x40e   : > { %v1013_v18 = vadd.f32 %v1012_v16, %v980_v10  ;;  %v1514_v10 = vld [vmem:[%s1757_s20 + $0x8] sm:$0xff] }
 0x40f   : > { %1202 = vmatpush.bf16.msrb.mxu2 %v1514_v10  ;;  %v1261_v10 = vperm.slane %v1880_v9, 5 }
 0x410   : > { %v1016_v19 = vadd.f32 %v1013_v18, %v1768_v5 }
 0x412   : > { %v1020_v20 = vsel %vm451_vm0, %v1016_v19, 0.0 }
 0x413   : > { %1021 = vadd.xlane.f32.xlu1 %v1020_v20  ;;  %1203 = vmatpush.bf16.msrb.mxu2 %v1513_v11 }
 0x47e   : > { %v1019_v27 = vpop.xlane.xlu0 %1018 }
 0x47f   : > { %v1030_v12 = vmul.f32 %v1887_v4, %v1019_v27 }
 0x481   : > { %v1032_v28 = vsub.f32 %v1015_v13, %v1030_v12 }
 0x483   : > { %v1034_v5 = vmul.f32 %v1032_v28, %v1032_v28 }
 0x485   : > { %v1036_v29 = vsel %vm451_vm0, %v1034_v5, 0.0 }
 0x486   : > { %v1022_v30 = vpop.xlane.xlu1 %1021  ;;  %1037 = vadd.xlane.f32.xlu2 %v1036_v29 }
 0x487   : > { %v1031_v17 = vmul.f32 %v1887_v4, %v1022_v30 }
 0x489   : > { %v1033_v31 = vsub.f32 %v1016_v19, %v1031_v17 }
 0x48b   : > { %v1035_v32 = vmul.f32 %v1033_v31, %v1033_v31 }
 0x48d   : > { %v1039_v33 = vsel %vm451_vm0, %v1035_v32, 0.0 }
 0x48e   : > { %1040 = vadd.xlane.f32.xlu0 %v1039_v33 }
 0x4f9   : > { %v1038_v35 = vpop.xlane.xlu2 %1037 }
 0x4fa   : > { %v1042_v36 = vmul.f32 %v1038_v35, %v1887_v4  ;;  %v1075_v35 = vperm.slane %v1880_v9, 3 }
 0x4fc   : > { %v1044_v37 = vadd.f32 1e-12, %v1042_v36 }
 0x4fe   : > { %1590 = vrsqrt.f32 %v1044_v37  ;;  %vm1052_vm9 = vweird.f32 %v1044_v37 }
 0x501   : > { %v1041_v39 = vpop.xlane.xlu0 %1040 }
 0x502   : > { %v1043_v40 = vmul.f32 %v1041_v39, %v1887_v4 }
 0x504   : > { %v1591_v41 = vpop.eup %1590  ;;  %v1045_v42 = vadd.f32 1e-12, %v1043_v40 }
 0x505   : > { %v1047_v43 = vmul.f32 %v1591_v41, %v1044_v37  ;;  %vm1053_vm8 = vweird.f32 %v1591_v41 }
 0x506   : > { %1592 = vrsqrt.f32 %v1045_v42  ;;  %vm1054_vm10 = vmor %vm1052_vm9, %vm1053_vm8  ;;  %vm1062_vm12 = vweird.f32 %v1045_v42 }
 0x507   : > { %v1048_v44 = vmul.f32 %v1591_v41, %v1047_v43 }
 0x509   : > { %v1049_v45 = vmul.f32 0.5, %v1048_v44 }
 0x50b   : > { %v1050_v46 = vsub.f32 1.5, %v1049_v45 }
 0x50c   : > { %v1593_v47 = vpop.eup %1592 }
 0x50d   : > { %v1051_v48 = vmul.f32 %v1591_v41, %v1050_v46  ;;  %v1057_v49 = vmul.f32 %v1593_v47, %v1045_v42  ;;  %vm1063_vm11 = vweird.f32 %v1593_v47 }
 0x50e   : > { %vm1064_vm13 = vmor %vm1062_vm12, %vm1063_vm11 }
 0x50f   : > { %v1058_v50 = vmul.f32 %v1593_v47, %v1057_v49  ;;  %v1055_v51 = vsel %vm1054_vm10, %v1591_v41, %v1051_v48 }
 0x510   : > { %v1066_v55 = vmul.f32 %v1055_v51, %v1032_v28 }
 0x511   : > { %v1059_v52 = vmul.f32 0.5, %v1058_v50 }
 0x512   : > { %v1069_v59 = vmul.f32 %v1068_v54, %v1066_v55 }
 0x513   : > { %v1060_v53 = vsub.f32 1.5, %v1059_v52 }
 0x514   : > { %v1072_v62 = vadd.f32 %v1071_v58, %v1069_v59 }
 0x515   : > { %v1061_v56 = vmul.f32 %v1593_v47, %v1060_v53 }
 0x517   : > { %v1065_v57 = vsel %vm1064_vm13, %v1593_v47, %v1061_v56 }
 0x518   : > { %v1067_v60 = vmul.f32 %v1065_v57, %v1033_v31 }
 0x51a   : > { %v1070_v61 = vmul.f32 %v1068_v54, %v1067_v60 }
 0x51c   : > { %v1073_v63 = vadd.f32 %v1071_v58, %v1070_v61 }
 0x51e   : > { %v1074_v0 = vpack.c.bf16 %v1073_v63, %v1072_v62 }
 0x520   : > { %1462 = vmatmul.msk.bf16.vlgmr.msra.gmra.mxu1 %vm451_vm0, %v1074_v0 }
 0x59d   : > { %v1108_v13 = vpop.f32.mrf.mxu1 }
 0x59e   : > { %v1109_v15 = vadd.f32 %v1555_v14, %v1108_v13 }
 0x5a0   : > { %v1115_v16 = vmul.f32 0.044715, %v1109_v15  ;;  %v1113_v30 = vmul.f32 0.5, %v1109_v15 }
 0x5a2   : > { %v1117_v18 = vmul.f32 %v1115_v16, %v1109_v15 }
 0x5a4   : > { %v1119_v19 = vmul.f32 %v1117_v18, %v1109_v15 }
 0x5a5   : > { %v1110_v20 = vpop.f32.mrf.mxu1 }
 0x5a6   : > { %v1121_v21 = vadd.f32 %v1119_v19, %v1109_v15  ;;  %v1111_v22 = vadd.f32 %v1555_v14, %v1110_v20 }
 0x5a8   : > { %v1116_v23 = vmul.f32 0.044715, %v1111_v22  ;;  %v1123_v24 = vmul.f32 0.7978846, %v1121_v21  ;;  %v1114_v17 = vmul.f32 0.5, %v1111_v22 }
 0x5aa   : > { %v1118_v25 = vmul.f32 %v1116_v23, %v1111_v22  ;;  %1594 = vtanh.f32 %v1123_v24 }
 0x5ac   : > { %v1120_v26 = vmul.f32 %v1118_v25, %v1111_v22 }
 0x5ae   : > { %v1122_v27 = vadd.f32 %v1120_v26, %v1111_v22 }
 0x5b0   : > { %v1124_v12 = vmul.f32 0.7978846, %v1122_v27  ;;  %v1595_v28 = vpop.eup %1594 }
 0x5b1   : > { %v1127_v5 = vadd.f32 1.0, %v1595_v28 }
 0x5b2   : > { %1596 = vtanh.f32 %v1124_v12 }
 0x5b3   : > { %v1129_v32 = vmul.f32 %v1127_v5, %v1113_v30 }
 0x5b8   : > { %v1597_v29 = vpop.eup %1596 }
 0x5b9   : > { %v1128_v31 = vadd.f32 1.0, %v1597_v29 }
 0x5bb   : > { %v1130_v33 = vmul.f32 %v1128_v31, %v1114_v17 }
 0x5bd   : > { %v1131_v34 = vpack.c.bf16 %v1130_v33, %v1129_v32 }
 0x5bf   : > { %1204 = vmatmul.bf16.vlgmr.msrb.gmra.mxu2 %v1131_v34 }
 0x642   : > { %v1205_v36 = vpop.f32.mrf.mxu2 }
 0x643   : > { %v1210_v37 = vadd.f32 %v1205_v36, %v1075_v35 }
 0x645   : > { %v1212_v38 = vadd.f32 %v1210_v37, %v1072_v62 }
 0x647   : > { %v1214_v39 = vsel %vm451_vm0, %v1212_v38, 0.0 }
 0x648   : > { %1215 = vadd.xlane.f32.xlu1 %v1214_v39 }
 0x64a   : > { %v1207_v40 = vpop.f32.mrf.mxu2 }
 0x64b   : > { %v1211_v41 = vadd.f32 %v1207_v40, %v1075_v35 }
 0x64d   : > { %v1213_v42 = vadd.f32 %v1211_v41, %v1073_v63 }
 0x64f   : > { %v1217_v43 = vsel %vm451_vm0, %v1213_v42, 0.0 }
 0x650   : > { %1218 = vadd.xlane.f32.xlu2 %v1217_v43 }
 0x6bb   : > { %v1216_v44 = vpop.xlane.xlu1 %1215 }
 0x6bc   : > { %v1220_v45 = vmul.f32 %v1216_v44, %v1887_v4 }
 0x6be   : > { %v1222_v46 = vsub.f32 %v1212_v38, %v1220_v45 }
 0x6c0   : > { %v1224_v47 = vmul.f32 %v1222_v46, %v1222_v46 }
 0x6c2   : > { %v1226_v48 = vsel %vm451_vm0, %v1224_v47, 0.0 }
 0x6c3   : > { %1227 = vadd.xlane.f32.xlu0 %v1226_v48  ;;  %v1219_v49 = vpop.xlane.xlu2 %1218 }
 0x6c4   : > { %v1221_v50 = vmul.f32 %v1219_v49, %v1887_v4 }
 0x6c6   : > { %v1223_v51 = vsub.f32 %v1213_v42, %v1221_v50 }
 0x6c8   : > { %v1225_v52 = vmul.f32 %v1223_v51, %v1223_v51 }
 0x6ca   : > { %v1229_v53 = vsel %vm451_vm0, %v1225_v52, 0.0 }
 0x6cb   : > { %1230 = vadd.xlane.f32.xlu1 %v1229_v53 }
 0x736   : > { %v1228_v54 = vpop.xlane.xlu0 %1227 }
 0x737   : > { %v1232_v55 = vmul.f32 %v1228_v54, %v1887_v4 }
 0x739   : > { %v1234_v56 = vadd.f32 1e-12, %v1232_v55 }
 0x73b   : > { %1598 = vrsqrt.f32 %v1234_v56  ;;  %vm1242_vm15 = vweird.f32 %v1234_v56 }
 0x73e   : > { %v1231_v57 = vpop.xlane.xlu1 %1230 }
 0x73f   : > { %v1233_v58 = vmul.f32 %v1231_v57, %v1887_v4 }
 0x741   : > { %v1599_v59 = vpop.eup %1598  ;;  %v1235_v60 = vadd.f32 1e-12, %v1233_v58 }
 0x742   : > { %v1237_v61 = vmul.f32 %v1599_v59, %v1234_v56  ;;  %vm1243_vm14 = vweird.f32 %v1599_v59 }
 0x743   : > { %1600 = vrsqrt.f32 %v1235_v60  ;;  %vm1244_vm1 = vmor %vm1242_vm15, %vm1243_vm14  ;;  %vm1252_vm3 = vweird.f32 %v1235_v60 }
 0x744   : > { %v1238_v62 = vmul.f32 %v1599_v59, %v1237_v61 }
 0x746   : > { %v1239_v63 = vmul.f32 0.5, %v1238_v62 }
 0x748   : > { %v1240_v0 = vsub.f32 1.5, %v1239_v63 }
 0x749   : > { %v1601_v1 = vpop.eup %1600 }
 0x74a   : > { %v1241_v2 = vmul.f32 %v1599_v59, %v1240_v0  ;;  %v1247_v3 = vmul.f32 %v1601_v1, %v1235_v60  ;;  %vm1253_vm2 = vweird.f32 %v1601_v1 }
 0x74b   : > { %vm1254_vm4 = vmor %vm1252_vm3, %vm1253_vm2 }
 0x74c   : > { %v1245_v7 = vsel %vm1244_vm1, %v1599_v59, %v1241_v2  ;;  %v1248_v8 = vmul.f32 %v1601_v1, %v1247_v3 }
 0x74d   : > { %v1256_v4 = vmul.f32 %v1245_v7, %v1222_v46 }
 0x74e   : > { %v1249_v11 = vmul.f32 0.5, %v1248_v8 }
 0x74f   : > { %v1259_v14 = vmul.f32 %v1258_v6, %v1256_v4 }
 0x750   : > { %v1250_v13 = vsub.f32 1.5, %v1249_v11 }
 0x751   : > { %v1262_v15 = vadd.f32 %v1261_v10, %v1259_v14 }
 0x752   : > { %v1251_v16 = vmul.f32 %v1601_v1, %v1250_v13 }
 0x754   : > { %v1255_v18 = vsel %vm1254_vm4, %v1601_v1, %v1251_v16 }
 0x755   : > { %v1257_v19 = vmul.f32 %v1255_v18, %v1223_v51  ;;  %1267 = sbr.rel (%p1495_p5) target bundleno = 1884 (0x75c), region = 79 }
 0x757   : > { %v1260_v20 = vmul.f32 %v1258_v6, %v1257_v19 }
 0x759   : > { %v1263_v21 = vadd.f32 %v1261_v10, %v1260_v20 }
 0x75a   : > { %1268 = vst.msk [vmem:[#allocation2] sm:$0xff] %vm451_vm0, %v1262_v15 }
 0x75b   : > { %1269 = vst.msk [vmem:[#allocation2 + $0x8] sm:$0xff] %vm451_vm0, %v1263_v21 }
 0x75c PF: > { %p1496_p6 = scmp.ne.s32.totalorder %s1717_s10, 1 }
 0x75e   : > { %1273 = sbr.rel (%p1496_p6) target bundleno = 1893 (0x765), region = 83 }
 0x763   : > { %1274 = vst.msk [vmem:[#allocation5] sm:$0xff] %vm451_vm0, %v1262_v15 }
 0x764   : > { %1275 = vst.msk [vmem:[#allocation5 + $0x8] sm:$0xff] %vm451_vm0, %v1263_v21 }
 0x765 PF: > { %p1525_p7 = scmp.eq.s32.totalorder %s1717_s10, 1  ;;  %s1659_s11 = smov [#allocation5]  }
 0x766   : > { %s1281_s28 = sshll.u32 %s1659_s11, 4  ;;  %s1283_s13 = sshll.u32 %s1947_s9, 4  ;;  %s1282_s28 = int_to_ptr.vmem [resolvable:$true] %s1281_s28  ;;  %s1284_s13 = int_to_ptr.hbm [resolvable:$true] %s1283_s13 }
 0x767   : > { %s1660_s16 = smov 128  }
 0x768   : > { %1522 = dma.vmem_to_hbm [thread:$0]  (%p1525_p7), %s1282_s28, 256, %s1284_s13, [#allocation6], %s1660_s16, %s1660_s16, %s1655_s15  }
 0x769   : > { %1637 = dma.done.wait (%p1525_p7), [#allocation6], 256  }
 0x76a   : > { %1639 = vsyncadd (%p1525_p7), [#allocation6], 4294967040 }
 0x76b PF: > { %s20_s30 = sadd.s32 1, %s1642_s30  }
 0x76c   : > { %p17_p8 = scmp.ge.s32.totalorder %s20_s30, 4  }
 0x76e   :  { %19 = sbr.rel (!%p17_p8) target bundleno = 1 (0x1), region = 132 }
 0x773   :  { %1300 = vsyncpa [#allocation6], 1 }
 0x774   :  { %1302 = vsyncpa [#allocation6 + $0x1], 1 }
 0x775   :  { %1303 = vsyncmov [#allocation4] }
 0x778   :  { %s1304_s10 = vpop.sfrf %1303 }
 0x779   :  { %p1501_p9 = scmp.ne.s32.totalorder %s1304_s10, 0 }
 0x77b   :  { %1308 = shalt.err (%p1501_p9)  }

</bundles_post_ra>
